<compile_context>
chip_gen: v7x
topology: tpu7x:2x2x1
jax: 0.10.0
libtpu: 0.0.40
codegen_flags: <defaults>
</compile_context>

<pallas_src>
import functools

import numpy as np
import jax
import jax.numpy as jnp
from jax.experimental import pallas as pl
from jax.experimental.pallas import tpu as pltpu

LANE = 128            # vreg lane width
SUB = 8               # vreg sublane height (f32)
STRIDE = 2
PADDING = 1
NEG_SLOPE = 0.2       # LeakyReLU slope inside downsample_block
CHANNELS = [1, 16, 32, 16, 8, 1]


def _round_up(v, m):
    return ((v + m - 1) // m) * m


# ------------------------------ fused kernel ------------------------------- #
def _disc_kernel(*refs, n_layers):
    """refs = (x_ref, [R_l, M_l, bias_l] * n_layers, o_ref); one sample per grid step."""
    x_ref, o_ref = refs[0], refs[-1]
    layer_refs = refs[1:-1]

    # Layer-0 activation slab: (H, W*Cin) for the current batch sample.
    a = x_ref[0].astype(jnp.bfloat16)

    for l in range(n_layers):
        r_ref, m_ref, b_ref = layer_refs[3 * l: 3 * l + 3]
        kh, ohp, _ = r_ref.shape          # (row taps, padded out rows, in rows)
        d = m_ref.shape[2]                # lane-padded OW*Cout

        acc = jnp.zeros((ohp, d), jnp.float32)
        for i in range(kh):               # 4 row taps, fully unrolled
            # Exact 0/1 row selection (includes the zero padding) on the MXU.
            rows = jnp.dot(r_ref[i], a,
                           preferred_element_type=jnp.float32).astype(jnp.bfloat16)
            # Column taps + conv weights folded into M[i]; accumulate in f32.
            acc = acc + jnp.dot(rows, m_ref[i],
                                preferred_element_type=jnp.float32)

        y = acc + b_ref[...]                          # bias, f32
        y = jnp.where(y > 0, y, NEG_SLOPE * y)        # LeakyReLU(0.2), f32 VPU

        if l == n_layers - 1:
            y = 1.0 / (1.0 + jnp.exp(-y))             # Sigmoid (EUP exp), f32
            o_ref[0] = y.astype(o_ref.dtype)          # lane-dense (8,128) store
        else:
            a = y.astype(jnp.bfloat16)                # next layer's input (VMEM only)


# -------------------- fold im2col + weights into matrices ------------------- #
def _build_tables(params, h_in):
    """Per layer: R[i] (row taps), M[i] (col taps x weights), bias row."""
    tables = []
    h = h_in                                   # logical input height (= width)
    rows_phys = h                              # physical rows of the input slab
    cols_phys = h * params[0][0].shape[1]      # physical cols (= W*Cin, layer 0)
    for w, b in params:
        cout, cin, kh, kw = w.shape
        oh = (h + 2 * PADDING - kh) // STRIDE + 1      # = h // 2
        ohp = max(SUB, _round_up(oh, SUB))             # sublane-padded rows
        d_log = oh * cout                              # logical feature width
        d_phys = _round_up(d_log, LANE)                # lane-padded feature width

        # R[i, oy, r] = 1  iff  r == STRIDE*oy + i - PADDING is a valid input row.
        r_np = np.zeros((kh, ohp, rows_phys), np.float32)
        for i in range(kh):
            for oy in range(oh):
                r = STRIDE * oy + i - PADDING
                if 0 <= r < h:
                    r_np[i, oy, r] = 1.0

        # P[c, ox, j] = 1  iff  input column c is column-tap j of output column ox.
        p_np = np.zeros((h, oh, kw), np.float32)
        for c in range(h):
            for ox in range(oh):
                j = c + PADDING - STRIDE * ox
                if 0 <= j < kw:
                    p_np[c, ox, j] = 1.0

        # M[i, c*Cin+ci, ox*Cout+co] = sum_j P[c, ox, j] * w[co, ci, i, j]
        m = jnp.einsum('cxj,oyij->icyxo', jnp.asarray(p_np), w.astype(jnp.float32))
        m = m.reshape(kh, h * cin, oh * cout)
        m = jnp.pad(m, ((0, 0), (0, cols_phys - h * cin), (0, d_phys - d_log)))

        bias_row = jnp.pad(jnp.tile(b.astype(jnp.float32), oh), (0, d_phys - d_log))

        tables.append((jnp.asarray(r_np, jnp.bfloat16),
                       m.astype(jnp.bfloat16),
                       bias_row.reshape(1, d_phys)))

        h, rows_phys, cols_phys = oh, ohp, d_phys      # next layer's input slab
    return tables, h                                   # h = final logical OH


# --------------------------------- forward ---------------------------------- #
def discriminator_forward(params, x_nchw):
    n, cin0, h, w = x_nchw.shape
    assert h == w, "square inputs expected"
    # NCHW -> (N, H, W*Cin) slab (Cin == 1 for this model).
    x_slab = jnp.transpose(x_nchw, (0, 2, 3, 1)).reshape(n, h, w * cin0)
    x_slab = x_slab.astype(jnp.float32)

    tables, oh_final = _build_tables(params, h)
    cout_final = params[-1][0].shape[0]
    ohp_last = tables[-1][0].shape[1]
    d_last = tables[-1][1].shape[2]

    flat_inputs = []
    in_specs = [pl.BlockSpec((1, h, w * cin0), lambda bi: (bi, 0, 0))]
    for r_t, m_t, b_t in tables:
        flat_inputs += [r_t, m_t, b_t]
        in_specs += [pl.BlockSpec(r_t.shape, lambda bi: (0, 0, 0)),
                     pl.BlockSpec(m_t.shape, lambda bi: (0, 0, 0)),
                     pl.BlockSpec(b_t.shape, lambda bi: (0, 0))]

    # Advisory cost estimate so XLA schedules the fused custom call sensibly.
    flops = 0
    for r_t, m_t, _ in tables:
        kh, ohp, rows = r_t.shape
        _, cols, d = m_t.shape
        flops += 2 * kh * (ohp * rows * cols + ohp * cols * d)
    flops *= n
    bytes_accessed = int(x_slab.size * 4 + n * ohp_last * d_last * 4
                         + sum(r_t.size * 2 + m_t.size * 2 + b_t.size * 4
                               for r_t, m_t, b_t in tables))

    out = pl.pallas_call(
        functools.partial(_disc_kernel, n_layers=len(params)),
        out_shape=jax.ShapeDtypeStruct((n, ohp_last, d_last), jnp.float32),
        grid=(n,),
        in_specs=in_specs,
        out_specs=pl.BlockSpec((1, ohp_last, d_last), lambda bi: (bi, 0, 0)),
        compiler_params=pltpu.CompilerParams(dimension_semantics=("parallel",)),
        cost_estimate=pl.CostEstimate(flops=int(flops),
                                      transcendentals=int(n * ohp_last * d_last),
                                      bytes_accessed=bytes_accessed),
    )(x_slab, *flat_inputs)

    # Crop the lane/sublane padding, restore NCHW, squeeze like torch .squeeze().
    y = out[:, :oh_final, :oh_final * cout_final]
    y = y.reshape(n, oh_final, oh_final, cout_final)
    y = jnp.transpose(y, (0, 3, 1, 2))
    return jnp.squeeze(y)


# -------------------------- deterministic params --------------------------- #
def init_params(key):
    params = []
    for i in range(5):
        cin, cout = CHANNELS[i], CHANNELS[i + 1]
        k = jax.random.fold_in(key, i)
        kw_, kb_ = jax.random.split(k)
        fan_in = cin * 4 * 4
        bound = 1.0 / float(np.sqrt(fan_in))
        w = jax.random.uniform(kw_, (cout, cin, 4, 4), jnp.float32, -bound, bound)
        b = jax.random.uniform(kb_, (cout,), jnp.float32, -bound, bound)
        params.append((w, b))
    return params


if __name__ == "__main__":
    key = jax.random.PRNGKey(0)
    params = init_params(jax.random.fold_in(key, 1))
    # Input: batch=2, 1 channel, 32x32 (5 halvings -> 1x1 spatial).
    x = jax.random.normal(jax.random.fold_in(key, 2), (2, 1, 32, 32), jnp.float32)

    fwd = jax.jit(lambda inp: discriminator_forward(params, inp))
    out = jax.block_until_ready(fwd(x))

    assert out.shape == (2,), f"unexpected output shape {out.shape}"
    assert bool(jnp.all((out >= 0.0) & (out <= 1.0))), "sigmoid range violated"
    print("KERNEL_OK")
</pallas_src>

<mosaic_0001>
module attributes {stable_mosaic.version = 11 : i64} {
  func.func @_disc_kernel(%arg0: i32, %arg1: memref<1x32x32xf32, #tpu.memory_space<vmem>>, %arg2: memref<4x16x32xbf16, #tpu.memory_space<vmem>>, %arg3: memref<4x32x256xbf16, #tpu.memory_space<vmem>>, %arg4: memref<1x256xf32, #tpu.memory_space<vmem>>, %arg5: memref<4x8x16xbf16, #tpu.memory_space<vmem>>, %arg6: memref<4x256x256xbf16, #tpu.memory_space<vmem>>, %arg7: memref<1x256xf32, #tpu.memory_space<vmem>>, %arg8: memref<4x8x8xbf16, #tpu.memory_space<vmem>>, %arg9: memref<4x256x128xbf16, #tpu.memory_space<vmem>>, %arg10: memref<1x128xf32, #tpu.memory_space<vmem>>, %arg11: memref<4x8x8xbf16, #tpu.memory_space<vmem>>, %arg12: memref<4x128x128xbf16, #tpu.memory_space<vmem>>, %arg13: memref<1x128xf32, #tpu.memory_space<vmem>>, %arg14: memref<4x8x8xbf16, #tpu.memory_space<vmem>>, %arg15: memref<4x128x128xbf16, #tpu.memory_space<vmem>>, %arg16: memref<1x128xf32, #tpu.memory_space<vmem>>, %arg17: memref<1x8x128xf32, #tpu.memory_space<vmem>>) attributes {dimension_semantics = [#tpu.dimension_semantics<parallel>], iteration_bounds = array<i64: 2>, scalar_prefetch = 0 : i64, scratch_operands = 0 : i64, tpu.core_type = #tpu.core_type<tc>, window_params = [{transform_indices = @transform_0, window_bounds = array<i64: 1, 32, 32>}, {pipeline_mode = #tpu.pipeline_mode<synchronous>, transform_indices = @transform_1, window_bounds = array<i64: 4, 16, 32>}, {pipeline_mode = #tpu.pipeline_mode<synchronous>, transform_indices = @transform_2, window_bounds = array<i64: 4, 32, 256>}, {pipeline_mode = #tpu.pipeline_mode<synchronous>, transform_indices = @transform_3, window_bounds = array<i64: 1, 256>}, {pipeline_mode = #tpu.pipeline_mode<synchronous>, transform_indices = @transform_4, window_bounds = array<i64: 4, 8, 16>}, {pipeline_mode = #tpu.pipeline_mode<synchronous>, transform_indices = @transform_5, window_bounds = array<i64: 4, 256, 256>}, {pipeline_mode = #tpu.pipeline_mode<synchronous>, transform_indices = @transform_6, window_bounds = array<i64: 1, 256>}, {pipeline_mode = #tpu.pipeline_mode<synchronous>, transform_indices = @transform_7, window_bounds = array<i64: 4, 8, 8>}, {pipeline_mode = #tpu.pipeline_mode<synchronous>, transform_indices = @transform_8, window_bounds = array<i64: 4, 256, 128>}, {pipeline_mode = #tpu.pipeline_mode<synchronous>, transform_indices = @transform_9, window_bounds = array<i64: 1, 128>}, {pipeline_mode = #tpu.pipeline_mode<synchronous>, transform_indices = @transform_10, window_bounds = array<i64: 4, 8, 8>}, {pipeline_mode = #tpu.pipeline_mode<synchronous>, transform_indices = @transform_11, window_bounds = array<i64: 4, 128, 128>}, {pipeline_mode = #tpu.pipeline_mode<synchronous>, transform_indices = @transform_12, window_bounds = array<i64: 1, 128>}, {pipeline_mode = #tpu.pipeline_mode<synchronous>, transform_indices = @transform_13, window_bounds = array<i64: 4, 8, 8>}, {pipeline_mode = #tpu.pipeline_mode<synchronous>, transform_indices = @transform_14, window_bounds = array<i64: 4, 128, 128>}, {pipeline_mode = #tpu.pipeline_mode<synchronous>, transform_indices = @transform_15, window_bounds = array<i64: 1, 128>}, {transform_indices = @transform_16, window_bounds = array<i64: 1, 8, 128>}]} {
    %c0 = arith.constant 0 : index
    %c0_0 = arith.constant 0 : index
    %c0_1 = arith.constant 0 : index
    %0 = vector.load %arg1[%c0, %c0_0, %c0_1] : memref<1x32x32xf32, #tpu.memory_space<vmem>>, vector<1x32x32xf32>
    %1 = vector.shape_cast %0 : vector<1x32x32xf32> to vector<32x32xf32>
    %2 = arith.truncf %1 : vector<32x32xf32> to vector<32x32xbf16>
    %cst = arith.constant 0.000000e+00 : f32
    %3 = vector.broadcast %cst : f32 to vector<16x256xf32>
    %c0_2 = arith.constant 0 : index
    %c0_3 = arith.constant 0 : index
    %c0_4 = arith.constant 0 : index
    %4 = vector.load %arg2[%c0_2, %c0_3, %c0_4] : memref<4x16x32xbf16, #tpu.memory_space<vmem>>, vector<1x16x32xbf16>
    %5 = vector.shape_cast %4 : vector<1x16x32xbf16> to vector<16x32xbf16>
    %cst_5 = arith.constant dense<0.000000e+00> : vector<16x32xf32>
    %6 = tpu.matmul %5, %2, %cst_5 {dimension_numbers = #tpu.dot_dimension_numbers<[1], [0], [0], [1], [0, 0, 1, 1], [], []>} : vector<16x32xbf16>, vector<32x32xbf16>, vector<16x32xf32> -> vector<16x32xf32>
    %7 = arith.truncf %6 : vector<16x32xf32> to vector<16x32xbf16>
    %c0_6 = arith.constant 0 : index
    %c0_7 = arith.constant 0 : index
    %c0_8 = arith.constant 0 : index
    %8 = vector.load %arg3[%c0_6, %c0_7, %c0_8] : memref<4x32x256xbf16, #tpu.memory_space<vmem>>, vector<1x32x256xbf16>
    %9 = vector.shape_cast %8 : vector<1x32x256xbf16> to vector<32x256xbf16>
    %cst_9 = arith.constant dense<0.000000e+00> : vector<16x256xf32>
    %10 = tpu.matmul %7, %9, %cst_9 {dimension_numbers = #tpu.dot_dimension_numbers<[1], [0], [0], [1], [0, 0, 1, 1], [], []>} : vector<16x32xbf16>, vector<32x256xbf16>, vector<16x256xf32> -> vector<16x256xf32>
    %11 = arith.addf %3, %10 : vector<16x256xf32>
    %c1 = arith.constant 1 : index
    %c0_10 = arith.constant 0 : index
    %c0_11 = arith.constant 0 : index
    %12 = vector.load %arg2[%c1, %c0_10, %c0_11] : memref<4x16x32xbf16, #tpu.memory_space<vmem>>, vector<1x16x32xbf16>
    %13 = vector.shape_cast %12 : vector<1x16x32xbf16> to vector<16x32xbf16>
    %cst_12 = arith.constant dense<0.000000e+00> : vector<16x32xf32>
    %14 = tpu.matmul %13, %2, %cst_12 {dimension_numbers = #tpu.dot_dimension_numbers<[1], [0], [0], [1], [0, 0, 1, 1], [], []>} : vector<16x32xbf16>, vector<32x32xbf16>, vector<16x32xf32> -> vector<16x32xf32>
    %15 = arith.truncf %14 : vector<16x32xf32> to vector<16x32xbf16>
    %c1_13 = arith.constant 1 : index
    %c0_14 = arith.constant 0 : index
    %c0_15 = arith.constant 0 : index
    %16 = vector.load %arg3[%c1_13, %c0_14, %c0_15] : memref<4x32x256xbf16, #tpu.memory_space<vmem>>, vector<1x32x256xbf16>
    %17 = vector.shape_cast %16 : vector<1x32x256xbf16> to vector<32x256xbf16>
    %cst_16 = arith.constant dense<0.000000e+00> : vector<16x256xf32>
    %18 = tpu.matmul %15, %17, %cst_16 {dimension_numbers = #tpu.dot_dimension_numbers<[1], [0], [0], [1], [0, 0, 1, 1], [], []>} : vector<16x32xbf16>, vector<32x256xbf16>, vector<16x256xf32> -> vector<16x256xf32>
    %19 = arith.addf %11, %18 : vector<16x256xf32>
    %c2 = arith.constant 2 : index
    %c0_17 = arith.constant 0 : index
    %c0_18 = arith.constant 0 : index
    %20 = vector.load %arg2[%c2, %c0_17, %c0_18] : memref<4x16x32xbf16, #tpu.memory_space<vmem>>, vector<1x16x32xbf16>
    %21 = vector.shape_cast %20 : vector<1x16x32xbf16> to vector<16x32xbf16>
    %cst_19 = arith.constant dense<0.000000e+00> : vector<16x32xf32>
    %22 = tpu.matmul %21, %2, %cst_19 {dimension_numbers = #tpu.dot_dimension_numbers<[1], [0], [0], [1], [0, 0, 1, 1], [], []>} : vector<16x32xbf16>, vector<32x32xbf16>, vector<16x32xf32> -> vector<16x32xf32>
    %23 = arith.truncf %22 : vector<16x32xf32> to vector<16x32xbf16>
    %c2_20 = arith.constant 2 : index
    %c0_21 = arith.constant 0 : index
    %c0_22 = arith.constant 0 : index
    %24 = vector.load %arg3[%c2_20, %c0_21, %c0_22] : memref<4x32x256xbf16, #tpu.memory_space<vmem>>, vector<1x32x256xbf16>
    %25 = vector.shape_cast %24 : vector<1x32x256xbf16> to vector<32x256xbf16>
    %cst_23 = arith.constant dense<0.000000e+00> : vector<16x256xf32>
    %26 = tpu.matmul %23, %25, %cst_23 {dimension_numbers = #tpu.dot_dimension_numbers<[1], [0], [0], [1], [0, 0, 1, 1], [], []>} : vector<16x32xbf16>, vector<32x256xbf16>, vector<16x256xf32> -> vector<16x256xf32>
    %27 = arith.addf %19, %26 : vector<16x256xf32>
    %c3 = arith.constant 3 : index
    %c0_24 = arith.constant 0 : index
    %c0_25 = arith.constant 0 : index
    %28 = vector.load %arg2[%c3, %c0_24, %c0_25] : memref<4x16x32xbf16, #tpu.memory_space<vmem>>, vector<1x16x32xbf16>
    %29 = vector.shape_cast %28 : vector<1x16x32xbf16> to vector<16x32xbf16>
    %cst_26 = arith.constant dense<0.000000e+00> : vector<16x32xf32>
    %30 = tpu.matmul %29, %2, %cst_26 {dimension_numbers = #tpu.dot_dimension_numbers<[1], [0], [0], [1], [0, 0, 1, 1], [], []>} : vector<16x32xbf16>, vector<32x32xbf16>, vector<16x32xf32> -> vector<16x32xf32>
    %31 = arith.truncf %30 : vector<16x32xf32> to vector<16x32xbf16>
    %c3_27 = arith.constant 3 : index
    %c0_28 = arith.constant 0 : index
    %c0_29 = arith.constant 0 : index
    %32 = vector.load %arg3[%c3_27, %c0_28, %c0_29] : memref<4x32x256xbf16, #tpu.memory_space<vmem>>, vector<1x32x256xbf16>
    %33 = vector.shape_cast %32 : vector<1x32x256xbf16> to vector<32x256xbf16>
    %cst_30 = arith.constant dense<0.000000e+00> : vector<16x256xf32>
    %34 = tpu.matmul %31, %33, %cst_30 {dimension_numbers = #tpu.dot_dimension_numbers<[1], [0], [0], [1], [0, 0, 1, 1], [], []>} : vector<16x32xbf16>, vector<32x256xbf16>, vector<16x256xf32> -> vector<16x256xf32>
    %35 = arith.addf %27, %34 : vector<16x256xf32>
    %c0_31 = arith.constant 0 : index
    %c0_32 = arith.constant 0 : index
    %36 = vector.load %arg4[%c0_31, %c0_32] : memref<1x256xf32, #tpu.memory_space<vmem>>, vector<1x256xf32>
    %37 = vector.broadcast %36 : vector<1x256xf32> to vector<16x256xf32>
    %38 = arith.addf %35, %37 : vector<16x256xf32>
    %cst_33 = arith.constant 0.000000e+00 : f32
    %39 = vector.broadcast %cst_33 : f32 to vector<16x256xf32>
    %40 = arith.cmpf ogt, %38, %39 : vector<16x256xf32>
    %cst_34 = arith.constant 2.000000e-01 : f32
    %41 = vector.broadcast %cst_34 : f32 to vector<16x256xf32>
    %42 = arith.mulf %41, %38 : vector<16x256xf32>
    %43 = arith.select %40, %38, %42 : vector<16x256xi1>, vector<16x256xf32>
    %44 = arith.truncf %43 : vector<16x256xf32> to vector<16x256xbf16>
    %cst_35 = arith.constant 0.000000e+00 : f32
    %45 = vector.broadcast %cst_35 : f32 to vector<8x256xf32>
    %c0_36 = arith.constant 0 : index
    %c0_37 = arith.constant 0 : index
    %c0_38 = arith.constant 0 : index
    %46 = vector.load %arg5[%c0_36, %c0_37, %c0_38] : memref<4x8x16xbf16, #tpu.memory_space<vmem>>, vector<1x8x16xbf16>
    %47 = vector.shape_cast %46 : vector<1x8x16xbf16> to vector<8x16xbf16>
    %cst_39 = arith.constant dense<0.000000e+00> : vector<8x256xf32>
    %48 = tpu.matmul %47, %44, %cst_39 {dimension_numbers = #tpu.dot_dimension_numbers<[1], [0], [0], [1], [0, 0, 1, 1], [], []>} : vector<8x16xbf16>, vector<16x256xbf16>, vector<8x256xf32> -> vector<8x256xf32>
    %49 = arith.truncf %48 : vector<8x256xf32> to vector<8x256xbf16>
    %c0_40 = arith.constant 0 : index
    %c0_41 = arith.constant 0 : index
    %c0_42 = arith.constant 0 : index
    %50 = vector.load %arg6[%c0_40, %c0_41, %c0_42] : memref<4x256x256xbf16, #tpu.memory_space<vmem>>, vector<1x256x256xbf16>
    %51 = vector.shape_cast %50 : vector<1x256x256xbf16> to vector<256x256xbf16>
    %cst_43 = arith.constant dense<0.000000e+00> : vector<8x256xf32>
    %52 = tpu.matmul %49, %51, %cst_43 {dimension_numbers = #tpu.dot_dimension_numbers<[1], [0], [0], [1], [0, 0, 1, 1], [], []>} : vector<8x256xbf16>, vector<256x256xbf16>, vector<8x256xf32> -> vector<8x256xf32>
    %53 = arith.addf %45, %52 : vector<8x256xf32>
    %c1_44 = arith.constant 1 : index
    %c0_45 = arith.constant 0 : index
    %c0_46 = arith.constant 0 : index
    %54 = vector.load %arg5[%c1_44, %c0_45, %c0_46] : memref<4x8x16xbf16, #tpu.memory_space<vmem>>, vector<1x8x16xbf16>
    %55 = vector.shape_cast %54 : vector<1x8x16xbf16> to vector<8x16xbf16>
    %cst_47 = arith.constant dense<0.000000e+00> : vector<8x256xf32>
    %56 = tpu.matmul %55, %44, %cst_47 {dimension_numbers = #tpu.dot_dimension_numbers<[1], [0], [0], [1], [0, 0, 1, 1], [], []>} : vector<8x16xbf16>, vector<16x256xbf16>, vector<8x256xf32> -> vector<8x256xf32>
    %57 = arith.truncf %56 : vector<8x256xf32> to vector<8x256xbf16>
    %c1_48 = arith.constant 1 : index
    %c0_49 = arith.constant 0 : index
    %c0_50 = arith.constant 0 : index
    %58 = vector.load %arg6[%c1_48, %c0_49, %c0_50] : memref<4x256x256xbf16, #tpu.memory_space<vmem>>, vector<1x256x256xbf16>
    %59 = vector.shape_cast %58 : vector<1x256x256xbf16> to vector<256x256xbf16>
    %cst_51 = arith.constant dense<0.000000e+00> : vector<8x256xf32>
    %60 = tpu.matmul %57, %59, %cst_51 {dimension_numbers = #tpu.dot_dimension_numbers<[1], [0], [0], [1], [0, 0, 1, 1], [], []>} : vector<8x256xbf16>, vector<256x256xbf16>, vector<8x256xf32> -> vector<8x256xf32>
    %61 = arith.addf %53, %60 : vector<8x256xf32>
    %c2_52 = arith.constant 2 : index
    %c0_53 = arith.constant 0 : index
    %c0_54 = arith.constant 0 : index
    %62 = vector.load %arg5[%c2_52, %c0_53, %c0_54] : memref<4x8x16xbf16, #tpu.memory_space<vmem>>, vector<1x8x16xbf16>
    %63 = vector.shape_cast %62 : vector<1x8x16xbf16> to vector<8x16xbf16>
    %cst_55 = arith.constant dense<0.000000e+00> : vector<8x256xf32>
    %64 = tpu.matmul %63, %44, %cst_55 {dimension_numbers = #tpu.dot_dimension_numbers<[1], [0], [0], [1], [0, 0, 1, 1], [], []>} : vector<8x16xbf16>, vector<16x256xbf16>, vector<8x256xf32> -> vector<8x256xf32>
    %65 = arith.truncf %64 : vector<8x256xf32> to vector<8x256xbf16>
    %c2_56 = arith.constant 2 : index
    %c0_57 = arith.constant 0 : index
    %c0_58 = arith.constant 0 : index
    %66 = vector.load %arg6[%c2_56, %c0_57, %c0_58] : memref<4x256x256xbf16, #tpu.memory_space<vmem>>, vector<1x256x256xbf16>
    %67 = vector.shape_cast %66 : vector<1x256x256xbf16> to vector<256x256xbf16>
    %cst_59 = arith.constant dense<0.000000e+00> : vector<8x256xf32>
    %68 = tpu.matmul %65, %67, %cst_59 {dimension_numbers = #tpu.dot_dimension_numbers<[1], [0], [0], [1], [0, 0, 1, 1], [], []>} : vector<8x256xbf16>, vector<256x256xbf16>, vector<8x256xf32> -> vector<8x256xf32>
    %69 = arith.addf %61, %68 : vector<8x256xf32>
    %c3_60 = arith.constant 3 : index
    %c0_61 = arith.constant 0 : index
    %c0_62 = arith.constant 0 : index
    %70 = vector.load %arg5[%c3_60, %c0_61, %c0_62] : memref<4x8x16xbf16, #tpu.memory_space<vmem>>, vector<1x8x16xbf16>
    %71 = vector.shape_cast %70 : vector<1x8x16xbf16> to vector<8x16xbf16>
    %cst_63 = arith.constant dense<0.000000e+00> : vector<8x256xf32>
    %72 = tpu.matmul %71, %44, %cst_63 {dimension_numbers = #tpu.dot_dimension_numbers<[1], [0], [0], [1], [0, 0, 1, 1], [], []>} : vector<8x16xbf16>, vector<16x256xbf16>, vector<8x256xf32> -> vector<8x256xf32>
    %73 = arith.truncf %72 : vector<8x256xf32> to vector<8x256xbf16>
    %c3_64 = arith.constant 3 : index
    %c0_65 = arith.constant 0 : index
    %c0_66 = arith.constant 0 : index
    %74 = vector.load %arg6[%c3_64, %c0_65, %c0_66] : memref<4x256x256xbf16, #tpu.memory_space<vmem>>, vector<1x256x256xbf16>
    %75 = vector.shape_cast %74 : vector<1x256x256xbf16> to vector<256x256xbf16>
    %cst_67 = arith.constant dense<0.000000e+00> : vector<8x256xf32>
    %76 = tpu.matmul %73, %75, %cst_67 {dimension_numbers = #tpu.dot_dimension_numbers<[1], [0], [0], [1], [0, 0, 1, 1], [], []>} : vector<8x256xbf16>, vector<256x256xbf16>, vector<8x256xf32> -> vector<8x256xf32>
    %77 = arith.addf %69, %76 : vector<8x256xf32>
    %c0_68 = arith.constant 0 : index
    %c0_69 = arith.constant 0 : index
    %78 = vector.load %arg7[%c0_68, %c0_69] : memref<1x256xf32, #tpu.memory_space<vmem>>, vector<1x256xf32>
    %79 = vector.broadcast %78 : vector<1x256xf32> to vector<8x256xf32>
    %80 = arith.addf %77, %79 : vector<8x256xf32>
    %cst_70 = arith.constant 0.000000e+00 : f32
    %81 = vector.broadcast %cst_70 : f32 to vector<8x256xf32>
    %82 = arith.cmpf ogt, %80, %81 : vector<8x256xf32>
    %cst_71 = arith.constant 2.000000e-01 : f32
    %83 = vector.broadcast %cst_71 : f32 to vector<8x256xf32>
    %84 = arith.mulf %83, %80 : vector<8x256xf32>
    %85 = arith.select %82, %80, %84 : vector<8x256xi1>, vector<8x256xf32>
    %86 = arith.truncf %85 : vector<8x256xf32> to vector<8x256xbf16>
    %cst_72 = arith.constant 0.000000e+00 : f32
    %87 = vector.broadcast %cst_72 : f32 to vector<8x128xf32>
    %c0_73 = arith.constant 0 : index
    %c0_74 = arith.constant 0 : index
    %c0_75 = arith.constant 0 : index
    %88 = vector.load %arg8[%c0_73, %c0_74, %c0_75] : memref<4x8x8xbf16, #tpu.memory_space<vmem>>, vector<1x8x8xbf16>
    %89 = vector.shape_cast %88 : vector<1x8x8xbf16> to vector<8x8xbf16>
    %cst_76 = arith.constant dense<0.000000e+00> : vector<8x256xf32>
    %90 = tpu.matmul %89, %86, %cst_76 {dimension_numbers = #tpu.dot_dimension_numbers<[1], [0], [0], [1], [0, 0, 1, 1], [], []>} : vector<8x8xbf16>, vector<8x256xbf16>, vector<8x256xf32> -> vector<8x256xf32>
    %91 = arith.truncf %90 : vector<8x256xf32> to vector<8x256xbf16>
    %c0_77 = arith.constant 0 : index
    %c0_78 = arith.constant 0 : index
    %c0_79 = arith.constant 0 : index
    %92 = vector.load %arg9[%c0_77, %c0_78, %c0_79] : memref<4x256x128xbf16, #tpu.memory_space<vmem>>, vector<1x256x128xbf16>
    %93 = vector.shape_cast %92 : vector<1x256x128xbf16> to vector<256x128xbf16>
    %cst_80 = arith.constant dense<0.000000e+00> : vector<8x128xf32>
    %94 = tpu.matmul %91, %93, %cst_80 {dimension_numbers = #tpu.dot_dimension_numbers<[1], [0], [0], [1], [0, 0, 1, 1], [], []>} : vector<8x256xbf16>, vector<256x128xbf16>, vector<8x128xf32> -> vector<8x128xf32>
    %95 = arith.addf %87, %94 : vector<8x128xf32>
    %c1_81 = arith.constant 1 : index
    %c0_82 = arith.constant 0 : index
    %c0_83 = arith.constant 0 : index
    %96 = vector.load %arg8[%c1_81, %c0_82, %c0_83] : memref<4x8x8xbf16, #tpu.memory_space<vmem>>, vector<1x8x8xbf16>
    %97 = vector.shape_cast %96 : vector<1x8x8xbf16> to vector<8x8xbf16>
    %cst_84 = arith.constant dense<0.000000e+00> : vector<8x256xf32>
    %98 = tpu.matmul %97, %86, %cst_84 {dimension_numbers = #tpu.dot_dimension_numbers<[1], [0], [0], [1], [0, 0, 1, 1], [], []>} : vector<8x8xbf16>, vector<8x256xbf16>, vector<8x256xf32> -> vector<8x256xf32>
    %99 = arith.truncf %98 : vector<8x256xf32> to vector<8x256xbf16>
    %c1_85 = arith.constant 1 : index
    %c0_86 = arith.constant 0 : index
    %c0_87 = arith.constant 0 : index
    %100 = vector.load %arg9[%c1_85, %c0_86, %c0_87] : memref<4x256x128xbf16, #tpu.memory_space<vmem>>, vector<1x256x128xbf16>
    %101 = vector.shape_cast %100 : vector<1x256x128xbf16> to vector<256x128xbf16>
    %cst_88 = arith.constant dense<0.000000e+00> : vector<8x128xf32>
    %102 = tpu.matmul %99, %101, %cst_88 {dimension_numbers = #tpu.dot_dimension_numbers<[1], [0], [0], [1], [0, 0, 1, 1], [], []>} : vector<8x256xbf16>, vector<256x128xbf16>, vector<8x128xf32> -> vector<8x128xf32>
    %103 = arith.addf %95, %102 : vector<8x128xf32>
    %c2_89 = arith.constant 2 : index
    %c0_90 = arith.constant 0 : index
    %c0_91 = arith.constant 0 : index
    %104 = vector.load %arg8[%c2_89, %c0_90, %c0_91] : memref<4x8x8xbf16, #tpu.memory_space<vmem>>, vector<1x8x8xbf16>
    %105 = vector.shape_cast %104 : vector<1x8x8xbf16> to vector<8x8xbf16>
    %cst_92 = arith.constant dense<0.000000e+00> : vector<8x256xf32>
    %106 = tpu.matmul %105, %86, %cst_92 {dimension_numbers = #tpu.dot_dimension_numbers<[1], [0], [0], [1], [0, 0, 1, 1], [], []>} : vector<8x8xbf16>, vector<8x256xbf16>, vector<8x256xf32> -> vector<8x256xf32>
    %107 = arith.truncf %106 : vector<8x256xf32> to vector<8x256xbf16>
    %c2_93 = arith.constant 2 : index
    %c0_94 = arith.constant 0 : index
    %c0_95 = arith.constant 0 : index
    %108 = vector.load %arg9[%c2_93, %c0_94, %c0_95] : memref<4x256x128xbf16, #tpu.memory_space<vmem>>, vector<1x256x128xbf16>
    %109 = vector.shape_cast %108 : vector<1x256x128xbf16> to vector<256x128xbf16>
    %cst_96 = arith.constant dense<0.000000e+00> : vector<8x128xf32>
    %110 = tpu.matmul %107, %109, %cst_96 {dimension_numbers = #tpu.dot_dimension_numbers<[1], [0], [0], [1], [0, 0, 1, 1], [], []>} : vector<8x256xbf16>, vector<256x128xbf16>, vector<8x128xf32> -> vector<8x128xf32>
    %111 = arith.addf %103, %110 : vector<8x128xf32>
    %c3_97 = arith.constant 3 : index
    %c0_98 = arith.constant 0 : index
    %c0_99 = arith.constant 0 : index
    %112 = vector.load %arg8[%c3_97, %c0_98, %c0_99] : memref<4x8x8xbf16, #tpu.memory_space<vmem>>, vector<1x8x8xbf16>
    %113 = vector.shape_cast %112 : vector<1x8x8xbf16> to vector<8x8xbf16>
    %cst_100 = arith.constant dense<0.000000e+00> : vector<8x256xf32>
    %114 = tpu.matmul %113, %86, %cst_100 {dimension_numbers = #tpu.dot_dimension_numbers<[1], [0], [0], [1], [0, 0, 1, 1], [], []>} : vector<8x8xbf16>, vector<8x256xbf16>, vector<8x256xf32> -> vector<8x256xf32>
    %115 = arith.truncf %114 : vector<8x256xf32> to vector<8x256xbf16>
    %c3_101 = arith.constant 3 : index
    %c0_102 = arith.constant 0 : index
    %c0_103 = arith.constant 0 : index
    %116 = vector.load %arg9[%c3_101, %c0_102, %c0_103] : memref<4x256x128xbf16, #tpu.memory_space<vmem>>, vector<1x256x128xbf16>
    %117 = vector.shape_cast %116 : vector<1x256x128xbf16> to vector<256x128xbf16>
    %cst_104 = arith.constant dense<0.000000e+00> : vector<8x128xf32>
    %118 = tpu.matmul %115, %117, %cst_104 {dimension_numbers = #tpu.dot_dimension_numbers<[1], [0], [0], [1], [0, 0, 1, 1], [], []>} : vector<8x256xbf16>, vector<256x128xbf16>, vector<8x128xf32> -> vector<8x128xf32>
    %119 = arith.addf %111, %118 : vector<8x128xf32>
    %c0_105 = arith.constant 0 : index
    %c0_106 = arith.constant 0 : index
    %120 = vector.load %arg10[%c0_105, %c0_106] : memref<1x128xf32, #tpu.memory_space<vmem>>, vector<1x128xf32>
    %121 = vector.broadcast %120 : vector<1x128xf32> to vector<8x128xf32>
    %122 = arith.addf %119, %121 : vector<8x128xf32>
    %cst_107 = arith.constant 0.000000e+00 : f32
    %123 = vector.broadcast %cst_107 : f32 to vector<8x128xf32>
    %124 = arith.cmpf ogt, %122, %123 : vector<8x128xf32>
    %cst_108 = arith.constant 2.000000e-01 : f32
    %125 = vector.broadcast %cst_108 : f32 to vector<8x128xf32>
    %126 = arith.mulf %125, %122 : vector<8x128xf32>
    %127 = arith.select %124, %122, %126 : vector<8x128xi1>, vector<8x128xf32>
    %128 = arith.truncf %127 : vector<8x128xf32> to vector<8x128xbf16>
    %cst_109 = arith.constant 0.000000e+00 : f32
    %129 = vector.broadcast %cst_109 : f32 to vector<8x128xf32>
    %c0_110 = arith.constant 0 : index
    %c0_111 = arith.constant 0 : index
    %c0_112 = arith.constant 0 : index
    %130 = vector.load %arg11[%c0_110, %c0_111, %c0_112] : memref<4x8x8xbf16, #tpu.memory_space<vmem>>, vector<1x8x8xbf16>
    %131 = vector.shape_cast %130 : vector<1x8x8xbf16> to vector<8x8xbf16>
    %cst_113 = arith.constant dense<0.000000e+00> : vector<8x128xf32>
    %132 = tpu.matmul %131, %128, %cst_113 {dimension_numbers = #tpu.dot_dimension_numbers<[1], [0], [0], [1], [0, 0, 1, 1], [], []>} : vector<8x8xbf16>, vector<8x128xbf16>, vector<8x128xf32> -> vector<8x128xf32>
    %133 = arith.truncf %132 : vector<8x128xf32> to vector<8x128xbf16>
    %c0_114 = arith.constant 0 : index
    %c0_115 = arith.constant 0 : index
    %c0_116 = arith.constant 0 : index
    %134 = vector.load %arg12[%c0_114, %c0_115, %c0_116] : memref<4x128x128xbf16, #tpu.memory_space<vmem>>, vector<1x128x128xbf16>
    %135 = vector.shape_cast %134 : vector<1x128x128xbf16> to vector<128x128xbf16>
    %cst_117 = arith.constant dense<0.000000e+00> : vector<8x128xf32>
    %136 = tpu.matmul %133, %135, %cst_117 {dimension_numbers = #tpu.dot_dimension_numbers<[1], [0], [0], [1], [0, 0, 1, 1], [], []>} : vector<8x128xbf16>, vector<128x128xbf16>, vector<8x128xf32> -> vector<8x128xf32>
    %137 = arith.addf %129, %136 : vector<8x128xf32>
    %c1_118 = arith.constant 1 : index
    %c0_119 = arith.constant 0 : index
    %c0_120 = arith.constant 0 : index
    %138 = vector.load %arg11[%c1_118, %c0_119, %c0_120] : memref<4x8x8xbf16, #tpu.memory_space<vmem>>, vector<1x8x8xbf16>
    %139 = vector.shape_cast %138 : vector<1x8x8xbf16> to vector<8x8xbf16>
    %cst_121 = arith.constant dense<0.000000e+00> : vector<8x128xf32>
    %140 = tpu.matmul %139, %128, %cst_121 {dimension_numbers = #tpu.dot_dimension_numbers<[1], [0], [0], [1], [0, 0, 1, 1], [], []>} : vector<8x8xbf16>, vector<8x128xbf16>, vector<8x128xf32> -> vector<8x128xf32>
    %141 = arith.truncf %140 : vector<8x128xf32> to vector<8x128xbf16>
    %c1_122 = arith.constant 1 : index
    %c0_123 = arith.constant 0 : index
    %c0_124 = arith.constant 0 : index
    %142 = vector.load %arg12[%c1_122, %c0_123, %c0_124] : memref<4x128x128xbf16, #tpu.memory_space<vmem>>, vector<1x128x128xbf16>
    %143 = vector.shape_cast %142 : vector<1x128x128xbf16> to vector<128x128xbf16>
    %cst_125 = arith.constant dense<0.000000e+00> : vector<8x128xf32>
    %144 = tpu.matmul %141, %143, %cst_125 {dimension_numbers = #tpu.dot_dimension_numbers<[1], [0], [0], [1], [0, 0, 1, 1], [], []>} : vector<8x128xbf16>, vector<128x128xbf16>, vector<8x128xf32> -> vector<8x128xf32>
    %145 = arith.addf %137, %144 : vector<8x128xf32>
    %c2_126 = arith.constant 2 : index
    %c0_127 = arith.constant 0 : index
    %c0_128 = arith.constant 0 : index
    %146 = vector.load %arg11[%c2_126, %c0_127, %c0_128] : memref<4x8x8xbf16, #tpu.memory_space<vmem>>, vector<1x8x8xbf16>
    %147 = vector.shape_cast %146 : vector<1x8x8xbf16> to vector<8x8xbf16>
    %cst_129 = arith.constant dense<0.000000e+00> : vector<8x128xf32>
    %148 = tpu.matmul %147, %128, %cst_129 {dimension_numbers = #tpu.dot_dimension_numbers<[1], [0], [0], [1], [0, 0, 1, 1], [], []>} : vector<8x8xbf16>, vector<8x128xbf16>, vector<8x128xf32> -> vector<8x128xf32>
    %149 = arith.truncf %148 : vector<8x128xf32> to vector<8x128xbf16>
    %c2_130 = arith.constant 2 : index
    %c0_131 = arith.constant 0 : index
    %c0_132 = arith.constant 0 : index
    %150 = vector.load %arg12[%c2_130, %c0_131, %c0_132] : memref<4x128x128xbf16, #tpu.memory_space<vmem>>, vector<1x128x128xbf16>
    %151 = vector.shape_cast %150 : vector<1x128x128xbf16> to vector<128x128xbf16>
    %cst_133 = arith.constant dense<0.000000e+00> : vector<8x128xf32>
    %152 = tpu.matmul %149, %151, %cst_133 {dimension_numbers = #tpu.dot_dimension_numbers<[1], [0], [0], [1], [0, 0, 1, 1], [], []>} : vector<8x128xbf16>, vector<128x128xbf16>, vector<8x128xf32> -> vector<8x128xf32>
    %153 = arith.addf %145, %152 : vector<8x128xf32>
    %c3_134 = arith.constant 3 : index
    %c0_135 = arith.constant 0 : index
    %c0_136 = arith.constant 0 : index
    %154 = vector.load %arg11[%c3_134, %c0_135, %c0_136] : memref<4x8x8xbf16, #tpu.memory_space<vmem>>, vector<1x8x8xbf16>
    %155 = vector.shape_cast %154 : vector<1x8x8xbf16> to vector<8x8xbf16>
    %cst_137 = arith.constant dense<0.000000e+00> : vector<8x128xf32>
    %156 = tpu.matmul %155, %128, %cst_137 {dimension_numbers = #tpu.dot_dimension_numbers<[1], [0], [0], [1], [0, 0, 1, 1], [], []>} : vector<8x8xbf16>, vector<8x128xbf16>, vector<8x128xf32> -> vector<8x128xf32>
    %157 = arith.truncf %156 : vector<8x128xf32> to vector<8x128xbf16>
    %c3_138 = arith.constant 3 : index
    %c0_139 = arith.constant 0 : index
    %c0_140 = arith.constant 0 : index
    %158 = vector.load %arg12[%c3_138, %c0_139, %c0_140] : memref<4x128x128xbf16, #tpu.memory_space<vmem>>, vector<1x128x128xbf16>
    %159 = vector.shape_cast %158 : vector<1x128x128xbf16> to vector<128x128xbf16>
    %cst_141 = arith.constant dense<0.000000e+00> : vector<8x128xf32>
    %160 = tpu.matmul %157, %159, %cst_141 {dimension_numbers = #tpu.dot_dimension_numbers<[1], [0], [0], [1], [0, 0, 1, 1], [], []>} : vector<8x128xbf16>, vector<128x128xbf16>, vector<8x128xf32> -> vector<8x128xf32>
    %161 = arith.addf %153, %160 : vector<8x128xf32>
    %c0_142 = arith.constant 0 : index
    %c0_143 = arith.constant 0 : index
    %162 = vector.load %arg13[%c0_142, %c0_143] : memref<1x128xf32, #tpu.memory_space<vmem>>, vector<1x128xf32>
    %163 = vector.broadcast %162 : vector<1x128xf32> to vector<8x128xf32>
    %164 = arith.addf %161, %163 : vector<8x128xf32>
    %cst_144 = arith.constant 0.000000e+00 : f32
    %165 = vector.broadcast %cst_144 : f32 to vector<8x128xf32>
    %166 = arith.cmpf ogt, %164, %165 : vector<8x128xf32>
    %cst_145 = arith.constant 2.000000e-01 : f32
    %167 = vector.broadcast %cst_145 : f32 to vector<8x128xf32>
    %168 = arith.mulf %167, %164 : vector<8x128xf32>
    %169 = arith.select %166, %164, %168 : vector<8x128xi1>, vector<8x128xf32>
    %170 = arith.truncf %169 : vector<8x128xf32> to vector<8x128xbf16>
    %cst_146 = arith.constant 0.000000e+00 : f32
    %171 = vector.broadcast %cst_146 : f32 to vector<8x128xf32>
    %c0_147 = arith.constant 0 : index
    %c0_148 = arith.constant 0 : index
    %c0_149 = arith.constant 0 : index
    %172 = vector.load %arg14[%c0_147, %c0_148, %c0_149] : memref<4x8x8xbf16, #tpu.memory_space<vmem>>, vector<1x8x8xbf16>
    %173 = vector.shape_cast %172 : vector<1x8x8xbf16> to vector<8x8xbf16>
    %cst_150 = arith.constant dense<0.000000e+00> : vector<8x128xf32>
    %174 = tpu.matmul %173, %170, %cst_150 {dimension_numbers = #tpu.dot_dimension_numbers<[1], [0], [0], [1], [0, 0, 1, 1], [], []>} : vector<8x8xbf16>, vector<8x128xbf16>, vector<8x128xf32> -> vector<8x128xf32>
    %175 = arith.truncf %174 : vector<8x128xf32> to vector<8x128xbf16>
    %c0_151 = arith.constant 0 : index
    %c0_152 = arith.constant 0 : index
    %c0_153 = arith.constant 0 : index
    %176 = vector.load %arg15[%c0_151, %c0_152, %c0_153] : memref<4x128x128xbf16, #tpu.memory_space<vmem>>, vector<1x128x128xbf16>
    %177 = vector.shape_cast %176 : vector<1x128x128xbf16> to vector<128x128xbf16>
    %cst_154 = arith.constant dense<0.000000e+00> : vector<8x128xf32>
    %178 = tpu.matmul %175, %177, %cst_154 {dimension_numbers = #tpu.dot_dimension_numbers<[1], [0], [0], [1], [0, 0, 1, 1], [], []>} : vector<8x128xbf16>, vector<128x128xbf16>, vector<8x128xf32> -> vector<8x128xf32>
    %179 = arith.addf %171, %178 : vector<8x128xf32>
    %c1_155 = arith.constant 1 : index
    %c0_156 = arith.constant 0 : index
    %c0_157 = arith.constant 0 : index
    %180 = vector.load %arg14[%c1_155, %c0_156, %c0_157] : memref<4x8x8xbf16, #tpu.memory_space<vmem>>, vector<1x8x8xbf16>
    %181 = vector.shape_cast %180 : vector<1x8x8xbf16> to vector<8x8xbf16>
    %cst_158 = arith.constant dense<0.000000e+00> : vector<8x128xf32>
    %182 = tpu.matmul %181, %170, %cst_158 {dimension_numbers = #tpu.dot_dimension_numbers<[1], [0], [0], [1], [0, 0, 1, 1], [], []>} : vector<8x8xbf16>, vector<8x128xbf16>, vector<8x128xf32> -> vector<8x128xf32>
    %183 = arith.truncf %182 : vector<8x128xf32> to vector<8x128xbf16>
    %c1_159 = arith.constant 1 : index
    %c0_160 = arith.constant 0 : index
    %c0_161 = arith.constant 0 : index
    %184 = vector.load %arg15[%c1_159, %c0_160, %c0_161] : memref<4x128x128xbf16, #tpu.memory_space<vmem>>, vector<1x128x128xbf16>
    %185 = vector.shape_cast %184 : vector<1x128x128xbf16> to vector<128x128xbf16>
    %cst_162 = arith.constant dense<0.000000e+00> : vector<8x128xf32>
    %186 = tpu.matmul %183, %185, %cst_162 {dimension_numbers = #tpu.dot_dimension_numbers<[1], [0], [0], [1], [0, 0, 1, 1], [], []>} : vector<8x128xbf16>, vector<128x128xbf16>, vector<8x128xf32> -> vector<8x128xf32>
    %187 = arith.addf %179, %186 : vector<8x128xf32>
    %c2_163 = arith.constant 2 : index
    %c0_164 = arith.constant 0 : index
    %c0_165 = arith.constant 0 : index
    %188 = vector.load %arg14[%c2_163, %c0_164, %c0_165] : memref<4x8x8xbf16, #tpu.memory_space<vmem>>, vector<1x8x8xbf16>
    %189 = vector.shape_cast %188 : vector<1x8x8xbf16> to vector<8x8xbf16>
    %cst_166 = arith.constant dense<0.000000e+00> : vector<8x128xf32>
    %190 = tpu.matmul %189, %170, %cst_166 {dimension_numbers = #tpu.dot_dimension_numbers<[1], [0], [0], [1], [0, 0, 1, 1], [], []>} : vector<8x8xbf16>, vector<8x128xbf16>, vector<8x128xf32> -> vector<8x128xf32>
    %191 = arith.truncf %190 : vector<8x128xf32> to vector<8x128xbf16>
    %c2_167 = arith.constant 2 : index
    %c0_168 = arith.constant 0 : index
    %c0_169 = arith.constant 0 : index
    %192 = vector.load %arg15[%c2_167, %c0_168, %c0_169] : memref<4x128x128xbf16, #tpu.memory_space<vmem>>, vector<1x128x128xbf16>
    %193 = vector.shape_cast %192 : vector<1x128x128xbf16> to vector<128x128xbf16>
    %cst_170 = arith.constant dense<0.000000e+00> : vector<8x128xf32>
    %194 = tpu.matmul %191, %193, %cst_170 {dimension_numbers = #tpu.dot_dimension_numbers<[1], [0], [0], [1], [0, 0, 1, 1], [], []>} : vector<8x128xbf16>, vector<128x128xbf16>, vector<8x128xf32> -> vector<8x128xf32>
    %195 = arith.addf %187, %194 : vector<8x128xf32>
    %c3_171 = arith.constant 3 : index
    %c0_172 = arith.constant 0 : index
    %c0_173 = arith.constant 0 : index
    %196 = vector.load %arg14[%c3_171, %c0_172, %c0_173] : memref<4x8x8xbf16, #tpu.memory_space<vmem>>, vector<1x8x8xbf16>
    %197 = vector.shape_cast %196 : vector<1x8x8xbf16> to vector<8x8xbf16>
    %cst_174 = arith.constant dense<0.000000e+00> : vector<8x128xf32>
    %198 = tpu.matmul %197, %170, %cst_174 {dimension_numbers = #tpu.dot_dimension_numbers<[1], [0], [0], [1], [0, 0, 1, 1], [], []>} : vector<8x8xbf16>, vector<8x128xbf16>, vector<8x128xf32> -> vector<8x128xf32>
    %199 = arith.truncf %198 : vector<8x128xf32> to vector<8x128xbf16>
    %c3_175 = arith.constant 3 : index
    %c0_176 = arith.constant 0 : index
    %c0_177 = arith.constant 0 : index
    %200 = vector.load %arg15[%c3_175, %c0_176, %c0_177] : memref<4x128x128xbf16, #tpu.memory_space<vmem>>, vector<1x128x128xbf16>
    %201 = vector.shape_cast %200 : vector<1x128x128xbf16> to vector<128x128xbf16>
    %cst_178 = arith.constant dense<0.000000e+00> : vector<8x128xf32>
    %202 = tpu.matmul %199, %201, %cst_178 {dimension_numbers = #tpu.dot_dimension_numbers<[1], [0], [0], [1], [0, 0, 1, 1], [], []>} : vector<8x128xbf16>, vector<128x128xbf16>, vector<8x128xf32> -> vector<8x128xf32>
    %203 = arith.addf %195, %202 : vector<8x128xf32>
    %c0_179 = arith.constant 0 : index
    %c0_180 = arith.constant 0 : index
    %204 = vector.load %arg16[%c0_179, %c0_180] : memref<1x128xf32, #tpu.memory_space<vmem>>, vector<1x128xf32>
    %205 = vector.broadcast %204 : vector<1x128xf32> to vector<8x128xf32>
    %206 = arith.addf %203, %205 : vector<8x128xf32>
    %cst_181 = arith.constant 0.000000e+00 : f32
    %207 = vector.broadcast %cst_181 : f32 to vector<8x128xf32>
    %208 = arith.cmpf ogt, %206, %207 : vector<8x128xf32>
    %cst_182 = arith.constant 2.000000e-01 : f32
    %209 = vector.broadcast %cst_182 : f32 to vector<8x128xf32>
    %210 = arith.mulf %209, %206 : vector<8x128xf32>
    %211 = arith.select %208, %206, %210 : vector<8x128xi1>, vector<8x128xf32>
    %cst_183 = arith.constant 0.000000e+00 : f32
    %212 = vector.broadcast %cst_183 : f32 to vector<8x128xf32>
    %213 = arith.subf %212, %211 : vector<8x128xf32>
    %214 = math.exp %213 : vector<8x128xf32>
    %cst_184 = arith.constant 1.000000e+00 : f32
    %215 = vector.broadcast %cst_184 : f32 to vector<8x128xf32>
    %216 = arith.addf %215, %214 : vector<8x128xf32>
    %cst_185 = arith.constant 1.000000e+00 : f32
    %217 = vector.broadcast %cst_185 : f32 to vector<8x128xf32>
    %218 = arith.divf %217, %216 : vector<8x128xf32>
    %c0_186 = arith.constant 0 : index
    %c0_187 = arith.constant 0 : index
    %c0_188 = arith.constant 0 : index
    %219 = vector.load %arg17[%c0_186, %c0_187, %c0_188] : memref<1x8x128xf32, #tpu.memory_space<vmem>>, vector<1x8x128xf32>
    %220 = vector.shape_cast %219 : vector<1x8x128xf32> to vector<8x128xf32>
    %221 = vector.shape_cast %218 : vector<8x128xf32> to vector<1x8x128xf32>
    tpu.vector_store %arg17[%c0_186, %c0_187, %c0_188], %221 {strides = array<i32>} : memref<1x8x128xf32, #tpu.memory_space<vmem>>, vector<1x8x128xf32>,
    return
  }
  func.func @transform_0(%arg0: i32) -> (i32, i32, i32) {
    %c0_i32 = arith.constant 0 : i32
    %c0_i32_0 = arith.constant 0 : i32
    %c0_i32_1 = arith.constant 0 : i32
    return %arg0, %c0_i32, %c0_i32_0 : i32, i32, i32
  }
  func.func @transform_1(%arg0: i32) -> (i32, i32, i32) {
    %c0_i32 = arith.constant 0 : i32
    %c0_i32_0 = arith.constant 0 : i32
    %c0_i32_1 = arith.constant 0 : i32
    %c0_i32_2 = arith.constant 0 : i32
    return %c0_i32, %c0_i32_0, %c0_i32_1 : i32, i32, i32
  }
  func.func @transform_2(%arg0: i32) -> (i32, i32, i32) {
    %c0_i32 = arith.constant 0 : i32
    %c0_i32_0 = arith.constant 0 : i32
    %c0_i32_1 = arith.constant 0 : i32
    %c0_i32_2 = arith.constant 0 : i32
    return %c0_i32, %c0_i32_0, %c0_i32_1 : i32, i32, i32
  }
  func.func @transform_3(%arg0: i32) -> (i32, i32) {
    %c0_i32 = arith.constant 0 : i32
    %c0_i32_0 = arith.constant 0 : i32
    %c0_i32_1 = arith.constant 0 : i32
    return %c0_i32, %c0_i32_0 : i32, i32
  }
  func.func @transform_4(%arg0: i32) -> (i32, i32, i32) {
    %c0_i32 = arith.constant 0 : i32
    %c0_i32_0 = arith.constant 0 : i32
    %c0_i32_1 = arith.constant 0 : i32
    %c0_i32_2 = arith.constant 0 : i32
    return %c0_i32, %c0_i32_0, %c0_i32_1 : i32, i32, i32
  }
  func.func @transform_5(%arg0: i32) -> (i32, i32, i32) {
    %c0_i32 = arith.constant 0 : i32
    %c0_i32_0 = arith.constant 0 : i32
    %c0_i32_1 = arith.constant 0 : i32
    %c0_i32_2 = arith.constant 0 : i32
    return %c0_i32, %c0_i32_0, %c0_i32_1 : i32, i32, i32
  }
  func.func @transform_6(%arg0: i32) -> (i32, i32) {
    %c0_i32 = arith.constant 0 : i32
    %c0_i32_0 = arith.constant 0 : i32
    %c0_i32_1 = arith.constant 0 : i32
    return %c0_i32, %c0_i32_0 : i32, i32
  }
  func.func @transform_7(%arg0: i32) -> (i32, i32, i32) {
    %c0_i32 = arith.constant 0 : i32
    %c0_i32_0 = arith.constant 0 : i32
    %c0_i32_1 = arith.constant 0 : i32
    %c0_i32_2 = arith.constant 0 : i32
    return %c0_i32, %c0_i32_0, %c0_i32_1 : i32, i32, i32
  }
  func.func @transform_8(%arg0: i32) -> (i32, i32, i32) {
    %c0_i32 = arith.constant 0 : i32
    %c0_i32_0 = arith.constant 0 : i32
    %c0_i32_1 = arith.constant 0 : i32
    %c0_i32_2 = arith.constant 0 : i32
    return %c0_i32, %c0_i32_0, %c0_i32_1 : i32, i32, i32
  }
  func.func @transform_9(%arg0: i32) -> (i32, i32) {
    %c0_i32 = arith.constant 0 : i32
    %c0_i32_0 = arith.constant 0 : i32
    %c0_i32_1 = arith.constant 0 : i32
    return %c0_i32, %c0_i32_0 : i32, i32
  }
  func.func @transform_10(%arg0: i32) -> (i32, i32, i32) {
    %c0_i32 = arith.constant 0 : i32
    %c0_i32_0 = arith.constant 0 : i32
    %c0_i32_1 = arith.constant 0 : i32
    %c0_i32_2 = arith.constant 0 : i32
    return %c0_i32, %c0_i32_0, %c0_i32_1 : i32, i32, i32
  }
  func.func @transform_11(%arg0: i32) -> (i32, i32, i32) {
    %c0_i32 = arith.constant 0 : i32
    %c0_i32_0 = arith.constant 0 : i32
    %c0_i32_1 = arith.constant 0 : i32
    %c0_i32_2 = arith.constant 0 : i32
    return %c0_i32, %c0_i32_0, %c0_i32_1 : i32, i32, i32
  }
  func.func @transform_12(%arg0: i32) -> (i32, i32) {
    %c0_i32 = arith.constant 0 : i32
    %c0_i32_0 = arith.constant 0 : i32
    %c0_i32_1 = arith.constant 0 : i32
    return %c0_i32, %c0_i32_0 : i32, i32
  }
  func.func @transform_13(%arg0: i32) -> (i32, i32, i32) {
    %c0_i32 = arith.constant 0 : i32
    %c0_i32_0 = arith.constant 0 : i32
    %c0_i32_1 = arith.constant 0 : i32
    %c0_i32_2 = arith.constant 0 : i32
    return %c0_i32, %c0_i32_0, %c0_i32_1 : i32, i32, i32
  }
  func.func @transform_14(%arg0: i32) -> (i32, i32, i32) {
    %c0_i32 = arith.constant 0 : i32
    %c0_i32_0 = arith.constant 0 : i32
    %c0_i32_1 = arith.constant 0 : i32
    %c0_i32_2 = arith.constant 0 : i32
    return %c0_i32, %c0_i32_0, %c0_i32_1 : i32, i32, i32
  }
  func.func @transform_15(%arg0: i32) -> (i32, i32) {
    %c0_i32 = arith.constant 0 : i32
    %c0_i32_0 = arith.constant 0 : i32
    %c0_i32_1 = arith.constant 0 : i32
    return %c0_i32, %c0_i32_0 : i32, i32
  }
  func.func @transform_16(%arg0: i32) -> (i32, i32, i32) {
    %c0_i32 = arith.constant 0 : i32
    %c0_i32_0 = arith.constant 0 : i32
    %c0_i32_1 = arith.constant 0 : i32
    return %arg0, %c0_i32, %c0_i32_0 : i32, i32, i32
  }
}

</mosaic_0001>

<bundles_post_ra>
// kernel: tile.27
= control target key start
LH: loop header
LB: loop body
LE: loop exit
PB: predicated region body
PF: predicated region fallthrough
CT: control target
= control target key end

     0   :  { %vm7_vm0 = vcmask 130048   ;;  %s37_s8 = smov 16   ;;  %s38_s9 = smov 32   ;;  %vm13_vm1 = vcmask 523648   ;;  %vm19_vm2 = vcmask 392448   ;;  %vm25_vm3 = vcmask 261248   ;;  %s55_s0 = inlined_call_operand.vmem [shape: f32[4,16], index: 0, kind: input, shape index: {}]   ;;  %s56_s1 = inlined_call_operand.vmem [shape: f32[64], index: 1, kind: output, shape index: {}]  }
   0x1   :  { %v4_v0 = vld [vmem:[%s55_s0] sm:$0xf]  ;;  %s36_s0 = smov 48  }
   0x2   :  { %5 = vst [vmem:[#allocation1] sm:$0xf] %v4_v0 }
   0x9   :  { %v10_v1 = vld [vmem:[#allocation1 + $0x3] sm:$0x1]   ;;  %v22_v2 = vld [vmem:[#allocation1 + $0x1] sm:$0x1]   ;;  %v6_v3 = vld [vmem:[#allocation1] sm:$0x1]  }
   0xa   :  { %11 = vrot.lane.b32.xlu0 %v10_v1, %s36_s0  ;;  %23 = vrot.lane.b32.xlu1 %v22_v2, %s37_s8  ;;  %v16_v4 = vld [vmem:[#allocation1 + $0x2] sm:$0x1]   ;;  %8 = vst.msk [vmem:[#allocation0] sm:$0x1] %vm7_vm0, %v6_v3  }
   0xe   :  { %17 = vrot.lane.b32.xlu0 %v16_v4, %s38_s9 }
  0x7c   :  { %v12_v5 = vpop.permute.xlu0 %11   ;;  %v24_v6 = vpop.permute.xlu1 %23  }
  0x7d   :  { %14 = vst.msk [vmem:[#allocation0] sm:$0x1] %vm13_vm1, %v12_v5  }
  0x80   :  { %v18_v7 = vpop.permute.xlu0 %17  }
  0x81   :  { %20 = vst.msk [vmem:[#allocation0] sm:$0x1] %vm19_vm2, %v18_v7  }
  0x82   :  { %26 = vst.msk [vmem:[#allocation0] sm:$0x1] %vm25_vm3, %v24_v6  }
  0x89   :  { %v30_v8 = vld [vmem:[#allocation0] sm:$0x1] }
  0x8a   :  { %32 = vst [vmem:[%s56_s1] sm:$0x1] %v30_v8 }

// kernel: tile.31
= control target key start
LH: loop header
LB: loop body
LE: loop exit
PB: predicated region body
PF: predicated region fallthrough
CT: control target
= control target key end

     0   :  { %vm7_vm0 = vcmask 64512   ;;  %vm13_vm1 = vcmask 130112   ;;  %s39_s0 = inlined_call_operand.vmem [shape: f32[2,8], index: 0, kind: input, shape index: {}]   ;;  %s40_s1 = inlined_call_operand.vmem [shape: f32[16], index: 1, kind: output, shape index: {}]  }
   0x1   :  { %v4_v0 = vld [vmem:[%s39_s0] sm:$0x3]  ;;  %s22_s0 = smov 8  }
   0x2   :  { %5 = vst [vmem:[#allocation1] sm:$0x3] %v4_v0 }
   0x9   :  { %v10_v1 = vld [vmem:[#allocation1 + $0x1] sm:$0x1]   ;;  %v6_v2 = vld [vmem:[#allocation1] sm:$0x1]  }
   0xa   :  { %11 = vrot.lane.b32.xlu0 %v10_v1, %s22_s0  ;;  %8 = vst.msk [vmem:[#allocation0] sm:$0x1] %vm7_vm0, %v6_v2  }
  0x7c   :  { %v12_v3 = vpop.permute.xlu0 %11  }
  0x7d   :  { %14 = vst.msk [vmem:[#allocation0] sm:$0x1] %vm13_vm1, %v12_v3  }
  0x84   :  { %v18_v4 = vld [vmem:[#allocation0] sm:$0x1] }
  0x85   :  { %20 = vst [vmem:[%s40_s1] sm:$0x1] %v18_v4 }

// kernel: tile.26
= control target key start
LH: loop header
LB: loop body
LE: loop exit
PB: predicated region body
PF: predicated region fallthrough
CT: control target
= control target key end

     0   :  { %s22_s0 = inlined_call_operand.vmem [shape: f32[16], index: 0, kind: input, shape index: {}]   ;;  %s23_s1 = inlined_call_operand.vmem [shape: f32[4,16], index: 1, kind: output, shape index: {}]  }
   0x1   :  { %v4_v0 = vld [vmem:[%s22_s0] ss:$0 sm:$0xff] }
   0x2   :  { %5 = vst [vmem:[%s23_s1] sm:$0xf] %v4_v0 }

// kernel: tile.30
= control target key start
LH: loop header
LB: loop body
LE: loop exit
PB: predicated region body
PF: predicated region fallthrough
CT: control target
= control target key end

     0   :  { %s22_s0 = inlined_call_operand.vmem [shape: f32[8], index: 0, kind: input, shape index: {}]   ;;  %s23_s1 = inlined_call_operand.vmem [shape: f32[2,8], index: 1, kind: output, shape index: {}]  }
   0x1   :  { %v4_v0 = vld [vmem:[%s22_s0] ss:$0 sm:$0xff] }
   0x2   :  { %5 = vst [vmem:[%s23_s1] sm:$0x3] %v4_v0 }

// kernel: tile.22
= control target key start
LH: loop header
LB: loop body
LE: loop exit
PB: predicated region body
PF: predicated region fallthrough
CT: control target
= control target key end

     0   :  { %s22_s0 = inlined_call_operand.vmem [shape: f32[32], index: 0, kind: input, shape index: {}]   ;;  %s23_s1 = inlined_call_operand.vmem [shape: f32[8,32], index: 1, kind: output, shape index: {}]  }
   0x1   :  { %v4_v0 = vld [vmem:[%s22_s0] ss:$0 sm:$0xff] }
   0x2   :  { %5 = vst [vmem:[%s23_s1] sm:$0xff] %v4_v0 }

// kernel: tile.18
= control target key start
LH: loop header
LB: loop body
LE: loop exit
PB: predicated region body
PF: predicated region fallthrough
CT: control target
= control target key end

     0   :  { %s28_s0 = inlined_call_operand.vmem [shape: f32[16], index: 0, kind: input, shape index: {}]   ;;  %s29_s1 = inlined_call_operand.vmem [shape: f32[16,16], index: 1, kind: output, shape index: {}]  }
   0x1   :  { %v4_v0 = vld [vmem:[%s28_s0] ss:$0 sm:$0xff] }
   0x2   :  { %5 = vst [vmem:[%s29_s1] sm:$0xff] %v4_v0  ;;  %8 = vst [vmem:[%s29_s1 + $0x8] sm:$0xff] %v4_v0 }

// kernel: _lambda_.1
= control target key start
LH: loop header
LB: loop body
LE: loop exit
PB: predicated region body
PF: predicated region fallthrough
CT: control target
= control target key end

     0   :  { %s5933_s21 = smov 0   ;;  %s7056_s0 = inlined_call_operand.vmem [shape: f32[2,32,32], index: 0, kind: input, shape index: {}]   ;;  %s7057_s1 = inlined_call_operand.vmem [shape: bf16[4,16,32], index: 1, kind: input, shape index: {}]   ;;  %s7058_s2 = inlined_call_operand.vmem [shape: bf16[4,32,256], index: 2, kind: input, shape index: {}]   ;;  %s7059_s3 = inlined_call_operand.vmem [shape: f32[1,256], index: 3, kind: input, shape index: {}]   ;;  %s7060_s4 = inlined_call_operand.vmem [shape: bf16[4,8,16], index: 4, kind: input, shape index: {}]   ;;  %s7061_s5 = inlined_call_operand.vmem [shape: bf16[4,256,256], index: 5, kind: input, shape index: {}]   ;;  %s7062_s6 = inlined_call_operand.vmem [shape: f32[1,256], index: 6, kind: input, shape index: {}]   ;;  %s7063_s7 = inlined_call_operand.vmem [shape: bf16[4,8,8], index: 7, kind: input, shape index: {}]   ;;  %s7064_s8 = inlined_call_operand.vmem [shape: bf16[4,256,128], index: 8, kind: input, shape index: {}]   ;;  %s7065_s9 = inlined_call_operand.vmem [shape: f32[1,128], index: 9, kind: input, shape index: {}]   ;;  %s7066_s10 = inlined_call_operand.vmem [shape: bf16[4,8,8], index: 10, kind: input, shape index: {}]   ;;  %s7067_s11 = inlined_call_operand.vmem [shape: bf16[4,128,128], index: 11, kind: input, shape index: {}]   ;;  %s7068_s12 = inlined_call_operand.vmem [shape: f32[1,128], index: 12, kind: input, shape index: {}]   ;;  %s7069_s13 = inlined_call_operand.vmem [shape: bf16[4,8,8], index: 13, kind: input, shape index: {}]   ;;  %s7070_s14 = inlined_call_operand.vmem [shape: bf16[4,128,128], index: 14, kind: input, shape index: {}]   ;;  %s7071_s15 = inlined_call_operand.vmem [shape: f32[1,128], index: 15, kind: input, shape index: {}]   ;;  %s7072_s16 = inlined_call_operand.vmem [shape: f32[2,8,128], index: 16, kind: output, shape index: {}]  }
   0x1   :  { %7073 = sst [smem:[#allocation2_spill]] %s7056_s0 }
   0x2 LB: > { %s4398_s22 = sadd.s32 4294967295, %s5843_s21   ;;  %p4402_p0 = scmp.ge.s32.totalorder %s5843_s21, 1  ;;  %s5843_s21 = sphi %s5933_s21, %s26_s21  }
   0x3   : > { %p462_p1 = scmp.lt.s32.totalorder %s5843_s21, 3 }
   0x5   : > { %p463_p2 = pnand %p4402_p0, %p462_p1 }
   0x6   : > { %p511_p3 = scmp.lt.s32.totalorder (!%p463_p2), %s4398_s22, 1  ;;  %v5845_v0 = vmov (!%p463_p2), 0.0   ;;  %vm5846_vm0 = vmmov (!%p463_p2), 0   ;;  %s7074_s26 = sld [smem:[#allocation2_spill]] (!%p463_p2)  ;;  %v5485_v7 = vld [vmem:[%s7057_s1] sm:$0xff] (!%p463_p2)   ;;  %vm534_vm1 = vcmask (!%p463_p2), 261120  }
   0x7   : > { %466 = sbr.rel (%p463_p2) target bundleno = 3256 (0xcb8), region = 84  ;;  %5222 = vmatprep.subr.bf16.mxu1 (!%p463_p2), %v5845_v0  ;;  %5226 = vmatprep.mubr.msk.bf16.mxu1 (!%p463_p2), %vm5846_vm0, %v5845_v0  ;;  %v5486_v8 = vld [vmem:[%s7057_s1 + $0x8] sm:$0xff] (!%p463_p2)   ;;  %v5487_v9 = vld [vmem:[%s7057_s1 + $0x10] sm:$0xff] (!%p463_p2)   ;;  %v5488_v10 = vld [vmem:[%s7057_s1 + $0x18] sm:$0xff] (!%p463_p2)   ;;  %v5847_v15 = vmov (!%p463_p2), 0   ;;  %vm1061_vm6 = vcmask (!%p463_p2), 130048  }
   0x8   : > { %v5489_v11 = vld [vmem:[%s7058_s2 + $0x24] ss:$8 sps:$4 sm:$0xff] (!%p463_p2)   ;;  %v5491_v12 = vld [vmem:[%s7058_s2 + $0x20] ss:$8 sps:$4 sm:$0xff] (!%p463_p2)   ;;  %v5492_v13 = vld [vmem:[%s7058_s2 + $0x34] ss:$8 sps:$4 sm:$0xff] (!%p463_p2)   ;;  %697 = vmatprep.mubr.bf16.mxu0 (!%p463_p2), %v5847_v15 }
   0x9   : > { %665 = vmatprep.subr.bf16.mxu0 (!%p463_p2), %v5489_v11  ;;  %v5494_v14 = vld [vmem:[%s7058_s2 + $0x30] ss:$8 sps:$4 sm:$0xff] (!%p463_p2)   ;;  %v5497_v16 = vld [vmem:[%s7058_s2 + $0x4] ss:$8 sps:$4 sm:$0xff] (!%p463_p2)   ;;  %v5495_v25 = vld [vmem:[%s7058_s2] ss:$8 sps:$4 sm:$0xff] (!%p463_p2)  }
   0xa   : > { %666 = vmatpush1.bf16.msra.mxu0 (!%p463_p2), %v5491_v12  ;;  %v5500_v28 = vld [vmem:[%s7058_s2 + $0x14] ss:$8 sps:$4 sm:$0xff] (!%p463_p2)   ;;  %v5498_v29 = vld [vmem:[%s7058_s2 + $0x10] ss:$8 sps:$4 sm:$0xff] (!%p463_p2)   ;;  %v5503_v30 = vld [vmem:[%s7058_s2 + $0x44] ss:$8 sps:$4 sm:$0xff] (!%p463_p2)  }
   0xb   : > { %667 = vmatprep.subr.bf16.mxu0 (!%p463_p2), %v5492_v13  ;;  %v5501_v36 = vld [vmem:[%s7058_s2 + $0x40] ss:$8 sps:$4 sm:$0xff] (!%p463_p2)   ;;  %v5506_v37 = vld [vmem:[%s7058_s2 + $0x54] ss:$8 sps:$4 sm:$0xff] (!%p463_p2)   ;;  %v5504_v40 = vld [vmem:[%s7058_s2 + $0x50] ss:$8 sps:$4 sm:$0xff] (!%p463_p2)  }
   0xc   : > { %v5509_v42 = vld [vmem:[%s7058_s2 + $0x64] ss:$8 sps:$4 sm:$0xff] (!%p463_p2)   ;;  %v5507_v45 = vld [vmem:[%s7058_s2 + $0x60] ss:$8 sps:$4 sm:$0xff] (!%p463_p2)   ;;  %v5512_v46 = vld [vmem:[%s7058_s2 + $0x74] ss:$8 sps:$4 sm:$0xff] (!%p463_p2)  }
   0xd   : > { %v5510_v47 = vld [vmem:[%s7058_s2 + $0x70] ss:$8 sps:$4 sm:$0xff] (!%p463_p2)   ;;  %v5515_v48 = vld [vmem:[%s7061_s5 + $0x104] ss:$8 sps:$4 sm:$0xff] (!%p463_p2)   ;;  %v5513_v49 = vld [vmem:[%s7061_s5 + $0x100] ss:$8 sps:$4 sm:$0xff] (!%p463_p2)  }
   0xe   : > { %s7076_s22 = smov (!%p511_p3, %s4398_s22), 1  ;;  %668 = vmatpush1.bf16.msra.mxu0 %v5494_v14  ;;  %v5518_v50 = vld [vmem:[%s7061_s5 + $0x114] ss:$8 sps:$4 sm:$0xff]   ;;  %v5516_v51 = vld [vmem:[%s7061_s5 + $0x110] ss:$8 sps:$4 sm:$0xff]   ;;  %vm2218_vm9 = vcmask 1043456  }
   0xf   : > { %s5033_s23 = sshll.u32 %s7076_s22, 5  ;;  %731 = vmatprep.subr.bf16.mxu0 %v5497_v16  ;;  %v5521_v52 = vld [vmem:[%s7061_s5 + $0x124] ss:$8 sps:$4 sm:$0xff]   ;;  %v5519_v53 = vld [vmem:[%s7061_s5 + $0x120] ss:$8 sps:$4 sm:$0xff]   ;;  %vm2214_vm10 = vcmask 64512  }
  0x10   : > { %s515_s27 = scalar_lea.vmem %s7074_s26, %s5033_s23  ;;  %v5524_v54 = vld [vmem:[%s7061_s5 + $0x134] ss:$8 sps:$4 sm:$0xff]   ;;  %v5522_v55 = vld [vmem:[%s7061_s5 + $0x130] ss:$8 sps:$4 sm:$0xff]   ;;  %v5527_v56 = vld [vmem:[%s7061_s5 + $0x144] ss:$8 sps:$4 sm:$0xff]  }
  0x11   : > { %v521_v1 = vld [vmem:[%s515_s27] sm:$0xff]  ;;  %v522_v2 = vld [vmem:[%s515_s27 + $0x8] sm:$0xff]  ;;  %v523_v3 = vld [vmem:[%s515_s27 + $0x10] sm:$0xff]  ;;  %s4405_s24 = sshll.u32 %s7076_s22, 3 }
  0x12   : > { %v525_v4 = vpack.c.bf16 %v522_v2, %v521_v1  ;;  %v524_v5 = vld [vmem:[%s515_s27 + $0x18] sm:$0xff]  ;;  %v5525_v57 = vld [vmem:[%s7061_s5 + $0x140] ss:$8 sps:$4 sm:$0xff]   ;;  %v5533_v60 = vld [vmem:[%s7061_s5 + $0x164] ss:$8 sps:$4 sm:$0xff]   ;;  %s519_s27 = scalar_lea.vmem %s7072_s16, %s4405_s24 }
  0x13   : > { %v526_v6 = vpack.c.bf16 %v524_v5, %v523_v3  ;;  %v5530_v58 = vld [vmem:[%s7061_s5 + $0x154] ss:$8 sps:$4 sm:$0xff]   ;;  %v5528_v59 = vld [vmem:[%s7061_s5 + $0x150] ss:$8 sps:$4 sm:$0xff]   ;;  %v5531_v61 = vld [vmem:[%s7061_s5 + $0x160] ss:$8 sps:$4 sm:$0xff]  }
  0x14   : > { %5223 = vmatpush3.bf16.msra.mxu1 %v525_v4  ;;  %v5536_v62 = vld [vmem:[%s7061_s5 + $0x174] ss:$8 sps:$4 sm:$0xff]   ;;  %v5534_v63 = vld [vmem:[%s7061_s5 + $0x170] ss:$8 sps:$4 sm:$0xff]   ;;  %v5539_v1 = vld [vmem:[%s7061_s5 + $0x184] ss:$8 sps:$4 sm:$0xff]  }
  0x15   : > { %5224 = vmatprep.subr.bf16.mxu1 %v5845_v0  ;;  %v5537_v2 = vld [vmem:[%s7061_s5 + $0x180] ss:$8 sps:$4 sm:$0xff]   ;;  %v5542_v3 = vld [vmem:[%s7061_s5 + $0x194] ss:$8 sps:$4 sm:$0xff]   ;;  %v5545_v5 = vld [vmem:[%s7061_s5 + $0x1a4] ss:$8 sps:$4 sm:$0xff]  }
  0x16   : > { %v5554_v11 = vld [vmem:[%s7061_s5 + $0x1d4] ss:$8 sps:$4 sm:$0xff]   ;;  %v5552_v12 = vld [vmem:[%s7061_s5 + $0x1d0] ss:$8 sps:$4 sm:$0xff]   ;;  %v5557_v13 = vld [vmem:[%s7061_s5 + $0x1e4] ss:$8 sps:$4 sm:$0xff]  }
  0x17   : > { %v5555_v14 = vld [vmem:[%s7061_s5 + $0x1e0] ss:$8 sps:$4 sm:$0xff]   ;;  %v5560_v16 = vld [vmem:[%s7061_s5 + $0x1f4] ss:$8 sps:$4 sm:$0xff]  }
  0x18   : > { %5225 = vmatpush3.bf16.msra.mxu1 %v526_v6 }
  0x19   : > { %5230 = vmatprep.subr.bf16.mxu1 %v5845_v0 }
  0x1b   : > { %5227 = vmatmul.mubr.msk.bf16.vlgmr.msra.gmra.mrb[0].mxu1 %vm534_vm1, %v5485_v7  ;;  %v5548_v7 = vld [vmem:[%s7061_s5 + $0x1b4] ss:$8 sps:$4 sm:$0xff]  }
  0x1c   : > { %5231 = vmatpush3.bf16.msra.mxu1 %v525_v4  ;;  %5234 = vmatprep.mubr.msk.bf16.mxu1 %vm5846_vm0, %v5845_v0 }
  0x1d   : > { %5232 = vmatprep.subr.bf16.mxu1 %v5845_v0 }
  0x20   : > { %5233 = vmatpush3.bf16.msra.mxu1 %v526_v6 }
  0x21   : > { %5238 = vmatprep.subr.bf16.mxu1 %v5845_v0 }
  0x23   : > { %5235 = vmatmul.mubr.msk.bf16.vlgmr.msra.gmra.mrb[4].mxu1 %vm534_vm1, %v5486_v8  ;;  %v5546_v8 = vld [vmem:[%s7061_s5 + $0x1b0] ss:$8 sps:$4 sm:$0xff]  }
  0x24   : > { %5239 = vmatpush3.bf16.msra.mxu1 %v525_v4  ;;  %5242 = vmatprep.mubr.msk.bf16.mxu1 %vm5846_vm0, %v5845_v0 }
  0x25   : > { %5240 = vmatprep.subr.bf16.mxu1 %v5845_v0 }
  0x28   : > { %5241 = vmatpush3.bf16.msra.mxu1 %v526_v6 }
  0x29   : > { %5246 = vmatprep.subr.bf16.mxu1 %v5845_v0 }
  0x2b   : > { %5243 = vmatmul.mubr.msk.bf16.vlgmr.msra.gmra.mrb[8].mxu1 %vm534_vm1, %v5487_v9  ;;  %v5551_v9 = vld [vmem:[%s7061_s5 + $0x1c4] ss:$8 sps:$4 sm:$0xff]  }
  0x2c   : > { %5247 = vmatpush3.bf16.msra.mxu1 %v525_v4  ;;  %5250 = vmatprep.mubr.msk.bf16.mxu1 %vm5846_vm0, %v5845_v0  ;;  %v5540_v4 = vld [vmem:[%s7061_s5 + $0x190] ss:$8 sps:$4 sm:$0xff]  }
  0x2d   : > { %5248 = vmatprep.subr.bf16.mxu1 %v5845_v0 }
  0x30   : > { %5249 = vmatpush3.bf16.msra.mxu1 %v526_v6  ;;  %v5543_v6 = vld [vmem:[%s7061_s5 + $0x1a0] ss:$8 sps:$4 sm:$0xff]  }
  0x33   : > { %5251 = vmatmul.mubr.msk.bf16.vlgmr.msra.gmra.mrb[12].mxu1 %vm534_vm1, %v5488_v10  ;;  %v5549_v10 = vld [vmem:[%s7061_s5 + $0x1c0] ss:$8 sps:$4 sm:$0xff]  }
  0x34   : > { %1097 = vmatprep.mubr.bf16.mxu1 %v5847_v15 }
  0xee   : > { %v572_v17 = vpop.f32.mrb[0].mxu1 }
  0xef   : > { %v5228_v18 = vpop.f32.mrb[1].mxu1 }
  0xf0   : > { %v575_v19 = vpop.f32.mrb[2].mxu1  ;;  %v1032_v18 = vlaneseq }
  0xf1   : > { %v579_v20 = vpack.c.bf16 %v575_v19, %v572_v17  ;;  %v5229_v21 = vpop.f32.mrb[3].mxu1  ;;  %v5558_v17 = vld [vmem:[%s7061_s5 + $0x1f0] ss:$8 sps:$4 sm:$0xff]  }
  0xf2   : > { %v6132_v19 = vshrl.u32 %v1032_v18, 7  ;;  %v1030_v21 = vld [vmem:[%s7059_s3] sm:$0x3] }
  0xf6   : > { %v629_v22 = vpop.f32.mrb[4].mxu1 }
  0xf7   : > { %v5236_v23 = vpop.f32.mrb[5].mxu1 }
  0xf8   : > { %v632_v24 = vpop.f32.mrb[6].mxu1 }
  0xf9   : > { %v636_v26 = vpack.c.bf16 %v632_v24, %v629_v22  ;;  %v5237_v27 = vpop.f32.mrb[7].mxu1  ;;  %v1038_v22 = vsub.s32 1, %v6132_v19 }
  0xfb   : > { %4420 = vmatmul.mubr.msk.bf16.vlgmr.msra.gmra.mrb[0].mxu0 %vm534_vm1, %v636_v26  ;;  %v1039_v24 = vrot.slane %v1030_v21, %v1038_v22 }
  0xfc   : > { %732 = vmatpush1.bf16.msra.mxu0 %v5495_v25  ;;  %763 = vmatprep.mubr.bf16.mxu0 %v5847_v15 }
  0xfd   : > { %733 = vmatprep.subr.bf16.mxu0 %v5500_v28 }
  0xfe   : > { %v819_v31 = vpop.f32.mrb[8].mxu1 }
  0xff   : > { %v5244_v32 = vpop.f32.mrb[9].mxu1 }
 0x100   : > { %734 = vmatpush1.bf16.msra.mxu0 %v5498_v29  ;;  %v822_v33 = vpop.f32.mrb[10].mxu1 }
 0x101   : > { %855 = vmatprep.subr.bf16.mxu0 %v5503_v30  ;;  %v826_v34 = vpack.c.bf16 %v822_v33, %v819_v31  ;;  %v5245_v35 = vpop.f32.mrb[11].mxu1 }
 0x106   : > { %v947_v38 = vpop.f32.mrb[12].mxu1 }
 0x107   : > { %4425 = vmatmul.mubr.msk.bf16.vlgmr.msra.gmra.mrb[0].mxu0 %vm534_vm1, %v579_v20  ;;  %v5252_v39 = vpop.f32.mrb[13].mxu1  ;;  %v1034_v20 = vsub.s32 0, %v6132_v19 }
 0x108   : > { %856 = vmatpush1.bf16.msra.mxu0 %v5501_v36  ;;  %887 = vmatprep.mubr.bf16.mxu0 %v5847_v15  ;;  %v950_v41 = vpop.f32.mrb[14].mxu1 }
 0x109   : > { %857 = vmatprep.subr.bf16.mxu0 %v5506_v37  ;;  %v954_v43 = vpack.c.bf16 %v950_v41, %v947_v38  ;;  %v5253_v44 = vpop.f32.mrb[15].mxu1  ;;  %v1035_v23 = vrot.slane %v1030_v21, %v1034_v20 }
 0x10a   : > { %v5563_v44 = vld [vmem:[%s7061_s5 + $0x4] ss:$8 sps:$4 sm:$0xff]  }
 0x10c   : > { %858 = vmatpush1.bf16.msra.mxu0 %v5504_v40 }
 0x10d   : > { %983 = vmatprep.subr.bf16.mxu0 %v5509_v42 }
 0x113   : > { %4438 = vmatmul.mubr.msk.bf16.vlgmr.msra.gmra.mrb[0].mxu0 %vm534_vm1, %v826_v34 }
 0x114   : > { %984 = vmatpush1.bf16.msra.mxu0 %v5507_v45  ;;  %1015 = vmatprep.mubr.bf16.mxu0 %v5847_v15  ;;  %v4453_v45 = vld [vmem:[%s7060_s4 + $0x4] sm:$0xf] }
 0x115   : > { %985 = vmatprep.subr.bf16.mxu0 %v5512_v46  ;;  %v5561_v46 = vld [vmem:[%s7061_s5] ss:$8 sps:$4 sm:$0xff]  }
 0x118   : > { %986 = vmatpush1.bf16.msra.mxu0 %v5510_v47  ;;  %v5566_v47 = vld [vmem:[%s7061_s5 + $0x14] ss:$8 sps:$4 sm:$0xff]  }
 0x119   : > { %1381 = vmatprep.subr.bf16.mxu0 %v5515_v48  ;;  %v5564_v48 = vld [vmem:[%s7061_s5 + $0x10] ss:$8 sps:$4 sm:$0xff]  }
 0x11f   : > { %4451 = vmatmul.mubr.msk.bf16.vlgmr.msra.gmra.mrb[0].mxu0 %vm534_vm1, %v954_v43  ;;  %v1060_v43 = vld [vmem:[%s7060_s4] sm:$0xf] }
 0x120   : > { %1382 = vmatpush1.bf16.msra.mxu0 %v5513_v49  ;;  %v5569_v49 = vld [vmem:[%s7061_s5 + $0x24] ss:$8 sps:$4 sm:$0xff]  }
 0x121   : > { %1383 = vmatprep.subr.bf16.mxu0 %v5518_v50  ;;  %v5567_v50 = vld [vmem:[%s7061_s5 + $0x20] ss:$8 sps:$4 sm:$0xff]  }
 0x124   : > { %1384 = vmatpush1.bf16.msra.mxu0 %v5516_v51  ;;  %v5572_v51 = vld [vmem:[%s7061_s5 + $0x34] ss:$8 sps:$4 sm:$0xff]  }
 0x125   : > { %1385 = vmatprep.subr.bf16.mxu0 %v5521_v52  ;;  %v5570_v52 = vld [vmem:[%s7061_s5 + $0x30] ss:$8 sps:$4 sm:$0xff]  }
 0x128   : > { %1386 = vmatpush1.bf16.msra.mxu0 %v5519_v53  ;;  %v5575_v53 = vld [vmem:[%s7061_s5 + $0x44] ss:$8 sps:$4 sm:$0xff]  }
 0x129   : > { %1387 = vmatprep.subr.bf16.mxu0 %v5524_v54  ;;  %v5573_v54 = vld [vmem:[%s7061_s5 + $0x40] ss:$8 sps:$4 sm:$0xff]  }
 0x12c   : > { %1388 = vmatpush1.bf16.msra.mxu0 %v5522_v55  ;;  %v5578_v55 = vld [vmem:[%s7061_s5 + $0x54] ss:$8 sps:$4 sm:$0xff]  }
 0x12d   : > { %1389 = vmatprep.subr.bf16.mxu0 %v5527_v56  ;;  %v5576_v56 = vld [vmem:[%s7061_s5 + $0x50] ss:$8 sps:$4 sm:$0xff]  }
 0x130   : > { %1390 = vmatpush1.bf16.msra.mxu0 %v5525_v57  ;;  %v5581_v57 = vld [vmem:[%s7061_s5 + $0x64] ss:$8 sps:$4 sm:$0xff]  }
 0x131   : > { %1391 = vmatprep.subr.bf16.mxu0 %v5530_v58  ;;  %v5579_v58 = vld [vmem:[%s7061_s5 + $0x60] ss:$8 sps:$4 sm:$0xff]  }
 0x134   : > { %1392 = vmatpush1.bf16.msra.mxu0 %v5528_v59  ;;  %v5584_v59 = vld [vmem:[%s7061_s5 + $0x74] ss:$8 sps:$4 sm:$0xff]  }
 0x135   : > { %1393 = vmatprep.subr.bf16.mxu0 %v5533_v60  ;;  %v5582_v60 = vld [vmem:[%s7061_s5 + $0x70] ss:$8 sps:$4 sm:$0xff]  }
 0x138   : > { %1394 = vmatpush1.bf16.msra.mxu0 %v5531_v61  ;;  %v5587_v61 = vld [vmem:[%s7061_s5 + $0x84] ss:$8 sps:$4 sm:$0xff]  }
 0x139   : > { %1395 = vmatprep.subr.bf16.mxu0 %v5536_v62  ;;  %v5585_v62 = vld [vmem:[%s7061_s5 + $0x80] ss:$8 sps:$4 sm:$0xff]  }
 0x13c   : > { %1396 = vmatpush1.bf16.msra.mxu0 %v5534_v63  ;;  %v5590_v63 = vld [vmem:[%s7061_s5 + $0x94] ss:$8 sps:$4 sm:$0xff]  }
 0x13d   : > { %1397 = vmatprep.subr.bf16.mxu0 %v5539_v1  ;;  %v5588_v1 = vld [vmem:[%s7061_s5 + $0x90] ss:$8 sps:$4 sm:$0xff]  }
 0x140   : > { %1398 = vmatpush1.bf16.msra.mxu0 %v5537_v2  ;;  %v5593_v2 = vld [vmem:[%s7061_s5 + $0xa4] ss:$8 sps:$4 sm:$0xff]  }
 0x141   : > { %1399 = vmatprep.subr.bf16.mxu0 %v5542_v3  ;;  %v5591_v3 = vld [vmem:[%s7061_s5 + $0xa0] ss:$8 sps:$4 sm:$0xff]  }
 0x144   : > { %1400 = vmatpush1.bf16.msra.mxu0 %v5540_v4  ;;  %v5596_v4 = vld [vmem:[%s7061_s5 + $0xb4] ss:$8 sps:$4 sm:$0xff]  }
 0x145   : > { %1401 = vmatprep.subr.bf16.mxu0 %v5545_v5  ;;  %v5594_v5 = vld [vmem:[%s7061_s5 + $0xb0] ss:$8 sps:$4 sm:$0xff]  }
 0x148   : > { %1402 = vmatpush1.bf16.msra.mxu0 %v5543_v6  ;;  %v5599_v6 = vld [vmem:[%s7061_s5 + $0xc4] ss:$8 sps:$4 sm:$0xff]  }
 0x149   : > { %1403 = vmatprep.subr.bf16.mxu0 %v5548_v7  ;;  %v5597_v7 = vld [vmem:[%s7061_s5 + $0xc0] ss:$8 sps:$4 sm:$0xff]  }
 0x14c   : > { %1404 = vmatpush1.bf16.msra.mxu0 %v5546_v8  ;;  %v5602_v8 = vld [vmem:[%s7061_s5 + $0xd4] ss:$8 sps:$4 sm:$0xff]  }
 0x14d   : > { %1405 = vmatprep.subr.bf16.mxu0 %v5551_v9  ;;  %v5600_v9 = vld [vmem:[%s7061_s5 + $0xd0] ss:$8 sps:$4 sm:$0xff]  }
 0x150   : > { %1406 = vmatpush1.bf16.msra.mxu0 %v5549_v10  ;;  %v5605_v10 = vld [vmem:[%s7061_s5 + $0xe4] ss:$8 sps:$4 sm:$0xff]  }
 0x151   : > { %1407 = vmatprep.subr.bf16.mxu0 %v5554_v11  ;;  %v5603_v11 = vld [vmem:[%s7061_s5 + $0xe0] ss:$8 sps:$4 sm:$0xff]  }
 0x154   : > { %1408 = vmatpush1.bf16.msra.mxu0 %v5552_v12  ;;  %v5608_v12 = vld [vmem:[%s7061_s5 + $0xf4] ss:$8 sps:$4 sm:$0xff]  }
 0x155   : > { %1409 = vmatprep.subr.bf16.mxu0 %v5557_v13  ;;  %v5606_v13 = vld [vmem:[%s7061_s5 + $0xf0] ss:$8 sps:$4 sm:$0xff]  }
 0x158   : > { %1410 = vmatpush1.bf16.msra.mxu0 %v5555_v14  ;;  %v5611_v14 = vld [vmem:[%s7061_s5 + $0x204] ss:$8 sps:$4 sm:$0xff]  }
 0x159   : > { %1411 = vmatprep.subr.bf16.mxu0 %v5560_v16 }
 0x15c   : > { %1412 = vmatpush1.bf16.msra.mxu0 %v5558_v17 }
 0x1f2   : > { %v1017_v25 = vpop.f32.mrb[0].mxu0 }
 0x1f3   : > { %v1042_v26 = vadd.f32 %v1035_v23, %v1017_v25  ;;  %v1019_v27 = vpop.f32.mrb[1].mxu0 }
 0x1f4   : > { %v1043_v28 = vadd.f32 %v1039_v24, %v1019_v27  ;;  %v1021_v29 = vpop.f32.mrb[2].mxu0  ;;  %v5612_v27 = vld [vmem:[%s7061_s5 + $0x210] ss:$8 sps:$4 sm:$0xff]  }
 0x1f5   : > { %v1050_v30 = vmul.f32 0.2, %v1042_v26  ;;  %v1044_v31 = vadd.f32 %v1035_v23, %v1021_v29  ;;  %v1023_v32 = vpop.f32.mrb[3].mxu0  ;;  %vm1046_vm2 = vcmp.gt.f32.partialorder %v1042_v26, 0.0  ;;  %v5609_v23 = vld [vmem:[%s7061_s5 + $0x200] ss:$8 sps:$4 sm:$0xff]  }
 0x1f6   : > { %v1051_v33 = vmul.f32 0.2, %v1043_v28  ;;  %v1045_v34 = vadd.f32 %v1039_v24, %v1023_v32  ;;  %vm1047_vm3 = vcmp.gt.f32.partialorder %v1043_v28, 0.0 }
 0x1f7   : > { %vm1048_vm4 = vcmp.gt.f32.partialorder %v1044_v31, 0.0  ;;  %v1052_v35 = vmul.f32 0.2, %v1044_v31  ;;  %v1054_v37 = vsel %vm1046_vm2, %v1042_v26, %v1050_v30  ;;  %v5614_v26 = vld [vmem:[%s7061_s5 + $0x214] ss:$8 sps:$4 sm:$0xff]  }
 0x1f8   : > { %vm1049_vm5 = vcmp.gt.f32.partialorder %v1045_v34, 0.0  ;;  %v1053_v36 = vmul.f32 0.2, %v1045_v34  ;;  %v1055_v39 = vsel %vm1047_vm3, %v1043_v28, %v1051_v33  ;;  %v5617_v28 = vld [vmem:[%s7061_s5 + $0x224] ss:$8 sps:$4 sm:$0xff]  }
 0x1f9   : > { %v1056_v38 = vsel %vm1048_vm4, %v1044_v31, %v1052_v35  ;;  %v5615_v35 = vld [vmem:[%s7061_s5 + $0x220] ss:$8 sps:$4 sm:$0xff]  }
 0x1fa   : > { %v6143_v40 = vpack.c.bf16 %v1056_v38, %v1054_v37  ;;  %v1057_v41 = vsel %vm1049_vm5, %v1045_v34, %v1053_v36  ;;  %v5623_v36 = vld [vmem:[%s7061_s5 + $0x234] ss:$8 sps:$4 sm:$0xff]   ;;  %v5621_v37 = vld [vmem:[%s7061_s5 + $0x230] ss:$8 sps:$4 sm:$0xff]   ;;  %v5629_v38 = vld [vmem:[%s7061_s5 + $0x244] ss:$8 sps:$4 sm:$0xff]  }
 0x1fb   : > { %v6145_v42 = vpack.c.bf16 %v1057_v41, %v1055_v39  ;;  %v4551_v39 = vld [vmem:[%s7060_s4 + $0x8] sm:$0xf]  ;;  %v5620_v41 = vld [vmem:[%s7061_s5 + $0x304] ss:$8 sps:$4 sm:$0xff]  }
 0x1fd   : > { %1065 = vmatprep.subr.bf16.mxu1 %v6145_v42  ;;  %1628 = vmatprep.subr.bf16.mxu0 %v6145_v42 }
 0x1fe   : > { %1066 = vmatpush1.bf16.msra.mxu1 %v6143_v40 }
 0x1ff   : > { %1145 = vmatprep.subr.bf16.mxu1 %v6145_v42 }
 0x201   : > { %4452 = vmatmul.mubr.msk.bf16.vlgmr.msra.gmra.mrb[16].mxu1 %vm1061_vm6, %v1060_v43  ;;  %v5635_v43 = vld [vmem:[%s7061_s5 + $0x254] ss:$8 sps:$4 sm:$0xff]  }
 0x202   : > { %1146 = vmatpush1.bf16.msra.mxu1 %v6143_v40  ;;  %1177 = vmatprep.mubr.bf16.mxu1 %v5847_v15 }
 0x203   : > { %1582 = vmatprep.subr.bf16.mxu1 %v5563_v44  ;;  %v5633_v44 = vld [vmem:[%s7061_s5 + $0x250] ss:$8 sps:$4 sm:$0xff]  }
 0x209   : > { %4454 = vmatmul.mubr.msk.bf16.vlgmr.msra.gmra.mrb[20].mxu1 %vm1061_vm6, %v4453_v45  ;;  %v5641_v45 = vld [vmem:[%s7061_s5 + $0x264] ss:$8 sps:$4 sm:$0xff]  }
 0x20a   : > { %1583 = vmatpush1.bf16.msra.mxu1 %v5561_v46  ;;  %v4617_v46 = vld [vmem:[%s7060_s4 + $0xc] sm:$0xf] }
 0x20b   : > { %1584 = vmatprep.subr.bf16.mxu1 %v5566_v47  ;;  %v5626_v47 = vld [vmem:[%s7061_s5 + $0x314] ss:$8 sps:$4 sm:$0xff]  }
 0x20e   : > { %1585 = vmatpush1.bf16.msra.mxu1 %v5564_v48  ;;  %v5639_v48 = vld [vmem:[%s7061_s5 + $0x260] ss:$8 sps:$4 sm:$0xff]  }
 0x20f   : > { %1586 = vmatprep.subr.bf16.mxu1 %v5569_v49  ;;  %v5647_v49 = vld [vmem:[%s7061_s5 + $0x274] ss:$8 sps:$4 sm:$0xff]  }
 0x212   : > { %1587 = vmatpush1.bf16.msra.mxu1 %v5567_v50  ;;  %v5624_v50 = vld [vmem:[%s7061_s5 + $0x310] ss:$8 sps:$4 sm:$0xff]  }
 0x213   : > { %1588 = vmatprep.subr.bf16.mxu1 %v5572_v51  ;;  %v5632_v51 = vld [vmem:[%s7061_s5 + $0x324] ss:$8 sps:$4 sm:$0xff]  }
 0x216   : > { %1589 = vmatpush1.bf16.msra.mxu1 %v5570_v52  ;;  %v5645_v52 = vld [vmem:[%s7061_s5 + $0x270] ss:$8 sps:$4 sm:$0xff]  }
 0x217   : > { %1590 = vmatprep.subr.bf16.mxu1 %v5575_v53  ;;  %v5653_v53 = vld [vmem:[%s7061_s5 + $0x284] ss:$8 sps:$4 sm:$0xff]  }
 0x21a   : > { %1591 = vmatpush1.bf16.msra.mxu1 %v5573_v54  ;;  %v5630_v54 = vld [vmem:[%s7061_s5 + $0x320] ss:$8 sps:$4 sm:$0xff]  }
 0x21b   : > { %1592 = vmatprep.subr.bf16.mxu1 %v5578_v55  ;;  %v5638_v55 = vld [vmem:[%s7061_s5 + $0x334] ss:$8 sps:$4 sm:$0xff]  }
 0x21e   : > { %1593 = vmatpush1.bf16.msra.mxu1 %v5576_v56  ;;  %v5651_v56 = vld [vmem:[%s7061_s5 + $0x280] ss:$8 sps:$4 sm:$0xff]  }
 0x21f   : > { %1594 = vmatprep.subr.bf16.mxu1 %v5581_v57  ;;  %v5659_v57 = vld [vmem:[%s7061_s5 + $0x294] ss:$8 sps:$4 sm:$0xff]  }
 0x222   : > { %1595 = vmatpush1.bf16.msra.mxu1 %v5579_v58  ;;  %v5636_v58 = vld [vmem:[%s7061_s5 + $0x330] ss:$8 sps:$4 sm:$0xff]  }
 0x223   : > { %1596 = vmatprep.subr.bf16.mxu1 %v5584_v59  ;;  %v5644_v59 = vld [vmem:[%s7061_s5 + $0x344] ss:$8 sps:$4 sm:$0xff]  }
 0x226   : > { %1597 = vmatpush1.bf16.msra.mxu1 %v5582_v60  ;;  %v5657_v60 = vld [vmem:[%s7061_s5 + $0x290] ss:$8 sps:$4 sm:$0xff]  }
 0x227   : > { %1598 = vmatprep.subr.bf16.mxu1 %v5587_v61  ;;  %v5665_v61 = vld [vmem:[%s7061_s5 + $0x2a4] ss:$8 sps:$4 sm:$0xff]  }
 0x22a   : > { %1599 = vmatpush1.bf16.msra.mxu1 %v5585_v62  ;;  %v5642_v62 = vld [vmem:[%s7061_s5 + $0x340] ss:$8 sps:$4 sm:$0xff]  }
 0x22b   : > { %1600 = vmatprep.subr.bf16.mxu1 %v5590_v63  ;;  %v5650_v63 = vld [vmem:[%s7061_s5 + $0x354] ss:$8 sps:$4 sm:$0xff]  }
 0x22e   : > { %1601 = vmatpush1.bf16.msra.mxu1 %v5588_v1  ;;  %v5663_v1 = vld [vmem:[%s7061_s5 + $0x2a0] ss:$8 sps:$4 sm:$0xff]  }
 0x22f   : > { %1602 = vmatprep.subr.bf16.mxu1 %v5593_v2  ;;  %v5648_v2 = vld [vmem:[%s7061_s5 + $0x350] ss:$8 sps:$4 sm:$0xff]  }
 0x232   : > { %1603 = vmatpush1.bf16.msra.mxu1 %v5591_v3  ;;  %v5656_v3 = vld [vmem:[%s7061_s5 + $0x364] ss:$8 sps:$4 sm:$0xff]  }
 0x233   : > { %1604 = vmatprep.subr.bf16.mxu1 %v5596_v4  ;;  %v5654_v4 = vld [vmem:[%s7061_s5 + $0x360] ss:$8 sps:$4 sm:$0xff]  }
 0x236   : > { %1605 = vmatpush1.bf16.msra.mxu1 %v5594_v5  ;;  %v5662_v5 = vld [vmem:[%s7061_s5 + $0x374] ss:$8 sps:$4 sm:$0xff]  }
 0x237   : > { %1606 = vmatprep.subr.bf16.mxu1 %v5599_v6  ;;  %v5660_v6 = vld [vmem:[%s7061_s5 + $0x370] ss:$8 sps:$4 sm:$0xff]  }
 0x23a   : > { %1607 = vmatpush1.bf16.msra.mxu1 %v5597_v7  ;;  %v5668_v7 = vld [vmem:[%s7061_s5 + $0x384] ss:$8 sps:$4 sm:$0xff]  }
 0x23b   : > { %1608 = vmatprep.subr.bf16.mxu1 %v5602_v8  ;;  %v5666_v8 = vld [vmem:[%s7061_s5 + $0x380] ss:$8 sps:$4 sm:$0xff]  }
 0x23e   : > { %1609 = vmatpush1.bf16.msra.mxu1 %v5600_v9  ;;  %v5671_v9 = vld [vmem:[%s7061_s5 + $0x2b4] ss:$8 sps:$4 sm:$0xff]  }
 0x23f   : > { %1610 = vmatprep.subr.bf16.mxu1 %v5605_v10  ;;  %v5674_v10 = vld [vmem:[%s7061_s5 + $0x394] ss:$8 sps:$4 sm:$0xff]  }
 0x242   : > { %1611 = vmatpush1.bf16.msra.mxu1 %v5603_v11  ;;  %v5669_v11 = vld [vmem:[%s7061_s5 + $0x2b0] ss:$8 sps:$4 sm:$0xff]  }
 0x243   : > { %1612 = vmatprep.subr.bf16.mxu1 %v5608_v12  ;;  %v5672_v12 = vld [vmem:[%s7061_s5 + $0x390] ss:$8 sps:$4 sm:$0xff]  }
 0x246   : > { %1613 = vmatpush1.bf16.msra.mxu1 %v5606_v13  ;;  %v5675_v13 = vld [vmem:[%s7061_s5 + $0x2c0] ss:$8 sps:$4 sm:$0xff]  }
 0x247   : > { %1864 = vmatprep.subr.bf16.mxu1 %v5611_v14  ;;  %v5677_v14 = vld [vmem:[%s7061_s5 + $0x2c4] ss:$8 sps:$4 sm:$0xff]  }
 0x2d4   : > { %v1099_v16 = vpop.f32.mrb[16].mxu1 }
 0x2d5   : > { %v1101_v17 = vpop.f32.mrb[17].mxu1  ;;  %v1106_v24 = vpack.c.bf16 %v1099_v16, %v1099_v16  ;;  %v5678_v16 = vld [vmem:[%s7061_s5 + $0x3a0] ss:$8 sps:$4 sm:$0xff]  }
 0x2d6   : > { %v1107_v18 = vpack.c.bf16 %v1101_v17, %v1101_v17  ;;  %v1103_v21 = vpop.f32.mrb[18].mxu1  ;;  %v5680_v17 = vld [vmem:[%s7061_s5 + $0x3a4] ss:$8 sps:$4 sm:$0xff]  }
 0x2d7   : > { %v1104_v25 = vpop.f32.mrb[19].mxu1  ;;  %v5686_v21 = vld [vmem:[%s7061_s5 + $0x3b4] ss:$8 sps:$4 sm:$0xff]  }
 0x2d8   : > { %1614 = vmatprep.mubr.bf16.mxu1 %v1107_v18  ;;  %v5683_v18 = vld [vmem:[%s7061_s5 + $0x2d4] ss:$8 sps:$4 sm:$0xff]   ;;  %v5687_v25 = vld [vmem:[%s7061_s5 + $0x2e0] ss:$8 sps:$4 sm:$0xff]  }
 0x2d9   : > { %1615 = vmatmul.mubr.bf16.vlgmr.msra.gmra.mrb[24].mxu1 %v1106_v24  ;;  %v5684_v24 = vld [vmem:[%s7061_s5 + $0x3b0] ss:$8 sps:$4 sm:$0xff]  }
 0x2da   : > { %1865 = vmatpush1.bf16.msra.mxu1 %v5609_v23  ;;  %v5681_v23 = vld [vmem:[%s7061_s5 + $0x2d0] ss:$8 sps:$4 sm:$0xff]  }
 0x2db   : > { %1866 = vmatprep.subr.bf16.mxu1 %v5614_v26  ;;  %v5689_v26 = vld [vmem:[%s7061_s5 + $0x2e4] ss:$8 sps:$4 sm:$0xff]  }
 0x2dc   : > { %v1179_v29 = vpop.f32.mrb[20].mxu1 }
 0x2dd   : > { %v1181_v30 = vpop.f32.mrb[21].mxu1  ;;  %v1186_v33 = vpack.c.bf16 %v1179_v29, %v1179_v29  ;;  %v5695_v29 = vld [vmem:[%s7061_s5 + $0x2f4] ss:$8 sps:$4 sm:$0xff]  }
 0x2de   : > { %v1187_v31 = vpack.c.bf16 %v1181_v30, %v1181_v30  ;;  %v1183_v32 = vpop.f32.mrb[22].mxu1  ;;  %1867 = vmatpush1.bf16.msra.mxu1 %v5612_v27  ;;  %v5690_v27 = vld [vmem:[%s7061_s5 + $0x3c0] ss:$8 sps:$4 sm:$0xff]   ;;  %v5698_v30 = vld [vmem:[%s7061_s5 + $0x3d4] ss:$8 sps:$4 sm:$0xff]  }
 0x2df   : > { %v1184_v34 = vpop.f32.mrb[23].mxu1  ;;  %1868 = vmatprep.subr.bf16.mxu1 %v5617_v28  ;;  %v5692_v28 = vld [vmem:[%s7061_s5 + $0x3c4] ss:$8 sps:$4 sm:$0xff]   ;;  %v5696_v32 = vld [vmem:[%s7061_s5 + $0x3d0] ss:$8 sps:$4 sm:$0xff]  }
 0x2e0   : > { %1413 = vmatprep.mubr.bf16.mxu0 %v1187_v31  ;;  %v5693_v31 = vld [vmem:[%s7061_s5 + $0x2f0] ss:$8 sps:$4 sm:$0xff]   ;;  %v5699_v34 = vld [vmem:[%s7061_s5 + $0x3e0] ss:$8 sps:$4 sm:$0xff]  }
 0x2e1   : > { %1414 = vmatmul.mubr.bf16.vlgmr.msra.gmra.mrb[4].mxu0 %v1186_v33  ;;  %v5701_v33 = vld [vmem:[%s7061_s5 + $0x3e4] ss:$8 sps:$4 sm:$0xff]  }
 0x2e2   : > { %1629 = vmatpush1.bf16.msra.mxu0 %v6143_v40  ;;  %1660 = vmatprep.mubr.bf16.mxu0 %v5847_v15 }
 0x2e3   : > { %1912 = vmatprep.subr.bf16.mxu0 %v6145_v42  ;;  %1869 = vmatpush1.bf16.msra.mxu1 %v5615_v35  ;;  %v5627_v42 = vld [vmem:[%s7061_s5 + $0x240] ss:$8 sps:$4 sm:$0xff]   ;;  %v5704_v35 = vld [vmem:[%s7061_s5 + $0x3f4] ss:$8 sps:$4 sm:$0xff]  }
 0x2e4   : > { %1870 = vmatprep.subr.bf16.mxu1 %v5623_v36  ;;  %v5702_v36 = vld [vmem:[%s7061_s5 + $0x3f0] ss:$8 sps:$4 sm:$0xff]  }
 0x2e7   : > { %1871 = vmatpush1.bf16.msra.mxu1 %v5621_v37  ;;  %v5705_v37 = vld [vmem:[%s7064_s8 + $0xc0] sm:$0xff]  }
 0x2e8   : > { %1872 = vmatprep.subr.bf16.mxu1 %v5629_v38 }
 0x2e9   : > { %4552 = vmatmul.mubr.msk.bf16.vlgmr.msra.gmra.mrb[8].mxu0 %vm1061_vm6, %v4551_v39 }
 0x2ea   : > { %1913 = vmatpush1.bf16.msra.mxu0 %v6143_v40  ;;  %1944 = vmatprep.mubr.bf16.mxu0 %v5847_v15  ;;  %v5618_v40 = vld [vmem:[%s7061_s5 + $0x300] ss:$8 sps:$4 sm:$0xff]  }
 0x2eb   : > { %2148 = vmatprep.subr.bf16.mxu0 %v5620_v41  ;;  %1873 = vmatpush1.bf16.msra.mxu1 %v5627_v42 }
 0x2ec   : > { %1874 = vmatprep.subr.bf16.mxu1 %v5635_v43 }
 0x2ef   : > { %1875 = vmatpush1.bf16.msra.mxu1 %v5633_v44 }
 0x2f0   : > { %1876 = vmatprep.subr.bf16.mxu1 %v5641_v45 }
 0x2f1   : > { %4618 = vmatmul.mubr.msk.bf16.vlgmr.msra.gmra.mrb[12].mxu0 %vm1061_vm6, %v4617_v46 }
 0x2f2   : > { %2149 = vmatpush1.bf16.msra.mxu0 %v5618_v40 }
 0x2f3   : > { %2150 = vmatprep.subr.bf16.mxu0 %v5626_v47  ;;  %1877 = vmatpush1.bf16.msra.mxu1 %v5639_v48 }
 0x2f4   : > { %1878 = vmatprep.subr.bf16.mxu1 %v5647_v49 }
 0x2f6   : > { %2151 = vmatpush1.bf16.msra.mxu0 %v5624_v50 }
 0x2f7   : > { %2152 = vmatprep.subr.bf16.mxu0 %v5632_v51  ;;  %1879 = vmatpush1.bf16.msra.mxu1 %v5645_v52 }
 0x2f8   : > { %1880 = vmatprep.subr.bf16.mxu1 %v5653_v53 }
 0x2fa   : > { %2153 = vmatpush1.bf16.msra.mxu0 %v5630_v54 }
 0x2fb   : > { %2154 = vmatprep.subr.bf16.mxu0 %v5638_v55  ;;  %1881 = vmatpush1.bf16.msra.mxu1 %v5651_v56 }
 0x2fc   : > { %1882 = vmatprep.subr.bf16.mxu1 %v5659_v57 }
 0x2fe   : > { %2155 = vmatpush1.bf16.msra.mxu0 %v5636_v58  ;;  %v5706_v58 = vld [vmem:[%s7064_s8 + $0x80] sm:$0xff]  }
 0x2ff   : > { %2156 = vmatprep.subr.bf16.mxu0 %v5644_v59  ;;  %1883 = vmatpush1.bf16.msra.mxu1 %v5657_v60 }
 0x300   : > { %1884 = vmatprep.subr.bf16.mxu1 %v5665_v61  ;;  %v5707_v61 = vld [vmem:[%s7064_s8 + $0xc8] sm:$0xff]  }
 0x302   : > { %2157 = vmatpush1.bf16.msra.mxu0 %v5642_v62  ;;  %v5708_v62 = vld [vmem:[%s7064_s8 + $0x88] sm:$0xff]  }
 0x303   : > { %2158 = vmatprep.subr.bf16.mxu0 %v5650_v63  ;;  %1885 = vmatpush1.bf16.msra.mxu1 %v5663_v1  ;;  %v5709_v63 = vld [vmem:[%s7064_s8 + $0xd0] sm:$0xff]  }
 0x304   : > { %1886 = vmatprep.subr.bf16.mxu1 %v5671_v9  ;;  %v5710_v1 = vld [vmem:[%s7064_s8 + $0x90] sm:$0xff]  }
 0x305   : > { %v5718_v9 = vld [vmem:[%s7064_s8 + $0xb0] sm:$0xff]  }
 0x306   : > { %2159 = vmatpush1.bf16.msra.mxu0 %v5648_v2  ;;  %v5711_v2 = vld [vmem:[%s7064_s8 + $0xd8] sm:$0xff]  }
 0x307   : > { %2160 = vmatprep.subr.bf16.mxu0 %v5656_v3  ;;  %1887 = vmatpush1.bf16.msra.mxu1 %v5669_v11  ;;  %v5712_v3 = vld [vmem:[%s7064_s8 + $0x98] sm:$0xff]  }
 0x308   : > { %1888 = vmatprep.subr.bf16.mxu1 %v5677_v14  ;;  %v5720_v11 = vld [vmem:[%s7064_s8 + $0xb8] sm:$0xff]  }
 0x30a   : > { %2161 = vmatpush1.bf16.msra.mxu0 %v5654_v4  ;;  %v5713_v4 = vld [vmem:[%s7064_s8 + $0xe0] sm:$0xff]  }
 0x30b   : > { %2162 = vmatprep.subr.bf16.mxu0 %v5662_v5  ;;  %1889 = vmatpush1.bf16.msra.mxu1 %v5675_v13  ;;  %v5714_v5 = vld [vmem:[%s7064_s8 + $0xa0] sm:$0xff]  }
 0x30c   : > { %1890 = vmatprep.subr.bf16.mxu1 %v5683_v18 }
 0x30e   : > { %2163 = vmatpush1.bf16.msra.mxu0 %v5660_v6  ;;  %v5715_v6 = vld [vmem:[%s7064_s8 + $0xe8] sm:$0xff]  }
 0x30f   : > { %2164 = vmatprep.subr.bf16.mxu0 %v5668_v7  ;;  %1891 = vmatpush1.bf16.msra.mxu1 %v5681_v23  ;;  %v5716_v7 = vld [vmem:[%s7064_s8 + $0xa8] sm:$0xff]  }
 0x310   : > { %1892 = vmatprep.subr.bf16.mxu1 %v5689_v26 }
 0x312   : > { %2165 = vmatpush1.bf16.msra.mxu0 %v5666_v8  ;;  %v5717_v8 = vld [vmem:[%s7064_s8 + $0xf0] sm:$0xff]  }
 0x313   : > { %2166 = vmatprep.subr.bf16.mxu0 %v5674_v10  ;;  %1893 = vmatpush1.bf16.msra.mxu1 %v5687_v25  ;;  %v5719_v10 = vld [vmem:[%s7064_s8 + $0xf8] sm:$0xff]  }
 0x314   : > { %1894 = vmatprep.subr.bf16.mxu1 %v5695_v29 }
 0x316   : > { %2167 = vmatpush1.bf16.msra.mxu0 %v5672_v12 }
 0x317   : > { %2168 = vmatprep.subr.bf16.mxu0 %v5680_v17  ;;  %1895 = vmatpush1.bf16.msra.mxu1 %v5693_v31 }
 0x31a   : > { %2169 = vmatpush1.bf16.msra.mxu0 %v5678_v16 }
 0x31b   : > { %2170 = vmatprep.subr.bf16.mxu0 %v5686_v21  ;;  %v2191_v21 = vld [vmem:[%s7062_s6] sm:$0x3] }
 0x31c   : > { %v2196_v23 = vrot.slane %v2191_v21, %v1034_v20  ;;  %v2200_v25 = vrot.slane %v2191_v21, %v1038_v22  ;;  %v2213_v22 = vld [vmem:[%s7063_s7] sm:$0xf]  ;;  %v5750_v21 = vld [vmem:[%s7064_s8 + $0x1d0] sm:$0xff]  }
 0x31e   : > { %2171 = vmatpush1.bf16.msra.mxu0 %v5684_v24 }
 0x31f   : > { %2172 = vmatprep.subr.bf16.mxu0 %v5692_v28 }
 0x322   : > { %2173 = vmatpush1.bf16.msra.mxu0 %v5690_v27 }
 0x323   : > { %2174 = vmatprep.subr.bf16.mxu0 %v5698_v30 }
 0x326   : > { %2175 = vmatpush1.bf16.msra.mxu0 %v5696_v32 }
 0x327   : > { %2176 = vmatprep.subr.bf16.mxu0 %v5701_v33 }
 0x32a   : > { %2177 = vmatpush1.bf16.msra.mxu0 %v5699_v34 }
 0x32b   : > { %2178 = vmatprep.subr.bf16.mxu0 %v5704_v35 }
 0x32e   : > { %2179 = vmatpush1.bf16.msra.mxu0 %v5702_v36 }
 0x32f   : > { %5046 = vmatprep.subr.bf16.mxu0 %v5705_v37 }
 0x3ac   : > { %v1616_v38 = vpop.f32.mrb[24].mxu1 }
 0x3ad   : > { %v1618_v39 = vpop.f32.mrb[25].mxu1 }
 0x3ae   : > { %v1620_v41 = vpop.f32.mrb[26].mxu1 }
 0x3af   : > { %v1621_v42 = vpop.f32.mrb[27].mxu1  ;;  %v5722_v41 = vld [vmem:[%s7064_s8] sm:$0xff]  }
 0x3b0   : > { %v5723_v42 = vld [vmem:[%s7064_s8 + $0x48] sm:$0xff]  }
 0x3b4   : > { %v1415_v43 = vpop.f32.mrb[4].mxu0 }
 0x3b5   : > { %v1617_v44 = vadd.f32 %v1616_v38, %v1415_v43  ;;  %v1417_v45 = vpop.f32.mrb[5].mxu0  ;;  %v5721_v38 = vld [vmem:[%s7064_s8 + $0x40] sm:$0xff]   ;;  %v5724_v43 = vld [vmem:[%s7064_s8 + $0x8] sm:$0xff]  }
 0x3b6   : > { %v1619_v46 = vadd.f32 %v1618_v39, %v1417_v45  ;;  %v1419_v40 = vpop.f32.mrb[6].mxu0  ;;  %v4685_v39 = vld [vmem:[%s7063_s7 + $0x4] sm:$0xf]  ;;  %v5726_v45 = vld [vmem:[%s7064_s8 + $0x10] sm:$0xff]  }
 0x3b7   : > { %v1420_v47 = vpop.f32.mrb[7].mxu0  ;;  %v5728_v40 = vld [vmem:[%s7064_s8 + $0x18] sm:$0xff]  }
 0x3b8   : > { %v5729_v47 = vld [vmem:[%s7064_s8 + $0x60] sm:$0xff]  }
 0x3bc   : > { %v1662_v48 = vpop.f32.mrb[8].mxu0 }
 0x3bd   : > { %v1664_v49 = vpop.f32.mrb[9].mxu0  ;;  %v1669_v52 = vpack.c.bf16 %v1662_v48, %v1662_v48  ;;  %v5730_v48 = vld [vmem:[%s7064_s8 + $0x20] sm:$0xff]  }
 0x3be   : > { %v1670_v50 = vpack.c.bf16 %v1664_v49, %v1664_v49  ;;  %v1666_v51 = vpop.f32.mrb[10].mxu0  ;;  %v5731_v49 = vld [vmem:[%s7064_s8 + $0x68] sm:$0xff]  }
 0x3bf   : > { %v1667_v53 = vpop.f32.mrb[11].mxu0  ;;  %v5733_v51 = vld [vmem:[%s7064_s8 + $0x70] sm:$0xff]  }
 0x3c0   : > { %1896 = vmatprep.mubr.bf16.mxu1 %v1670_v50  ;;  %v5732_v50 = vld [vmem:[%s7064_s8 + $0x28] sm:$0xff]   ;;  %v5735_v53 = vld [vmem:[%s7064_s8 + $0x78] sm:$0xff]  }
 0x3c1   : > { %1897 = vmatmul.mubr.bf16.vlgmr.msra.gmra.mrb[28].mxu1 %v1669_v52  ;;  %v5734_v52 = vld [vmem:[%s7064_s8 + $0x30] sm:$0xff]  }
 0x3c2   : > { %2257 = vmatprep.mubr.bf16.mxu1 %v5847_v15 }
 0x3c4   : > { %v1946_v54 = vpop.f32.mrb[12].mxu0 }
 0x3c5   : > { %v1948_v55 = vpop.f32.mrb[13].mxu0  ;;  %v1953_v59 = vpack.c.bf16 %v1946_v54, %v1946_v54  ;;  %v5736_v54 = vld [vmem:[%s7064_s8 + $0x38] sm:$0xff]  }
 0x3c6   : > { %v1954_v56 = vpack.c.bf16 %v1948_v55, %v1948_v55  ;;  %v1950_v57 = vpop.f32.mrb[14].mxu0  ;;  %v5737_v55 = vld [vmem:[%s7064_s8 + $0x140] sm:$0xff]  }
 0x3c7   : > { %v1951_v60 = vpop.f32.mrb[15].mxu0 }
 0x3c8   : > { %2180 = vmatprep.mubr.bf16.mxu0 %v1954_v56  ;;  %v5738_v60 = vld [vmem:[%s7064_s8 + $0x100] sm:$0xff]  }
 0x3c9   : > { %2181 = vmatmul.mubr.bf16.vlgmr.msra.gmra.mrb[16].mxu0 %v1953_v59 }
 0x3ca   : > { %5047 = vmatpush3.bf16.msra.mxu0 %v5706_v58 }
 0x3cb   : > { %5048 = vmatprep.subr.bf16.mxu0 %v5707_v61 }
 0x3ce   : > { %5049 = vmatpush3.bf16.msra.mxu0 %v5708_v62 }
 0x3cf   : > { %5050 = vmatprep.subr.bf16.mxu0 %v5709_v63  ;;  %v5739_v63 = vld [vmem:[%s7064_s8 + $0x148] sm:$0xff]  }
 0x3d2   : > { %5051 = vmatpush3.bf16.msra.mxu0 %v5710_v1  ;;  %v5740_v1 = vld [vmem:[%s7064_s8 + $0x108] sm:$0xff]  }
 0x3d3   : > { %5052 = vmatprep.subr.bf16.mxu0 %v5711_v2  ;;  %v5741_v2 = vld [vmem:[%s7064_s8 + $0x150] sm:$0xff]  }
 0x3d6   : > { %5053 = vmatpush3.bf16.msra.mxu0 %v5712_v3 }
 0x3d7   : > { %5054 = vmatprep.subr.bf16.mxu0 %v5713_v4 }
 0x3da   : > { %5055 = vmatpush3.bf16.msra.mxu0 %v5714_v5 }
 0x3db   : > { %5056 = vmatprep.subr.bf16.mxu0 %v5715_v6 }
 0x3de   : > { %5057 = vmatpush3.bf16.msra.mxu0 %v5716_v7 }
 0x3df   : > { %5058 = vmatprep.subr.bf16.mxu0 %v5717_v8 }
 0x3e2   : > { %5059 = vmatpush3.bf16.msra.mxu0 %v5718_v9  ;;  %v5743_v9 = vld [vmem:[%s7064_s8 + $0x110] sm:$0xff]  }
 0x3e3   : > { %5060 = vmatprep.subr.bf16.mxu0 %v5719_v10  ;;  %v4752_v10 = vld [vmem:[%s7063_s7 + $0x8] sm:$0xf] }
 0x3e6   : > { %5061 = vmatpush3.bf16.msra.mxu0 %v5720_v11  ;;  %v5742_v11 = vld [vmem:[%s7064_s8 + $0x1c0] sm:$0xff]  }
 0x494   : > { %v1898_v12 = vpop.f32.mrb[28].mxu1 }
 0x495   : > { %v1905_v13 = vadd.f32 %v1898_v12, %v1617_v44  ;;  %v1900_v14 = vpop.f32.mrb[29].mxu1  ;;  %v5725_v44 = vld [vmem:[%s7064_s8 + $0x50] sm:$0xff]   ;;  %v4803_v12 = vld [vmem:[%s7063_s7 + $0xc] sm:$0xf] }
 0x496   : > { %v1906_v16 = vadd.f32 %v1900_v14, %v1619_v46  ;;  %v1902_v17 = vpop.f32.mrb[30].mxu1  ;;  %v5727_v46 = vld [vmem:[%s7064_s8 + $0x58] sm:$0xff]  }
 0x497   : > { %v1903_v18 = vpop.f32.mrb[31].mxu1  ;;  %v5745_v14 = vld [vmem:[%s7064_s8 + $0x158] sm:$0xff]   ;;  %v5748_v17 = vld [vmem:[%s7064_s8 + $0x188] sm:$0xff]  }
 0x498   : > { %v5749_v18 = vld [vmem:[%s7064_s8 + $0x160] sm:$0xff]  }
 0x49c   : > { %v2182_v24 = vpop.f32.mrb[16].mxu0 }
 0x49d   : > { %v2189_v26 = vadd.f32 %v2182_v24, %v1905_v13  ;;  %v2184_v27 = vpop.f32.mrb[17].mxu0  ;;  %v5744_v13 = vld [vmem:[%s7064_s8 + $0x180] sm:$0xff]   ;;  %v5752_v24 = vld [vmem:[%s7064_s8 + $0x190] sm:$0xff]  }
 0x49e   : > { %v2190_v28 = vadd.f32 %v2184_v27, %v1906_v16  ;;  %v2186_v29 = vpop.f32.mrb[18].mxu0  ;;  %v5747_v16 = vld [vmem:[%s7064_s8 + $0x118] sm:$0xff]   ;;  %v5755_v27 = vld [vmem:[%s7064_s8 + $0x128] sm:$0xff]  }
 0x49f   : > { %v2203_v30 = vadd.f32 %v2196_v23, %v2189_v26  ;;  %v2187_v31 = vpop.f32.mrb[19].mxu0  ;;  %v5751_v23 = vld [vmem:[%s7064_s8 + $0x120] sm:$0xff]   ;;  %v5754_v26 = vld [vmem:[%s7064_s8 + $0x1d8] sm:$0xff]   ;;  %v5757_v29 = vld [vmem:[%s7064_s8 + $0x170] sm:$0xff]  }
 0x4a0   : > { %v2204_v32 = vadd.f32 %v2200_v25, %v2190_v28  ;;  %v5753_v25 = vld [vmem:[%s7064_s8 + $0x168] sm:$0xff]   ;;  %v5756_v28 = vld [vmem:[%s7064_s8 + $0x198] sm:$0xff]   ;;  %v5759_v31 = vld [vmem:[%s7064_s8 + $0x130] sm:$0xff]  }
 0x4a1   : > { %vm2205_vm7 = vcmp.gt.f32.partialorder %v2203_v30, 0.0  ;;  %v2207_v33 = vmul.f32 0.2, %v2203_v30 }
 0x4a2   : > { %vm2206_vm8 = vcmp.gt.f32.partialorder %v2204_v32, 0.0  ;;  %v2208_v34 = vmul.f32 0.2, %v2204_v32 }
 0x4a3   : > { %v2209_v35 = vsel %vm2205_vm7, %v2203_v30, %v2207_v33  ;;  %v5758_v30 = vld [vmem:[%s7064_s8 + $0x1e0] sm:$0xff]   ;;  %v5761_v33 = vld [vmem:[%s7064_s8 + $0x178] sm:$0xff]  }
 0x4a4   : > { %v2210_v36 = vsel %vm2206_vm8, %v2204_v32, %v2208_v34  ;;  %v2211_v37 = vpack.c.bf16 %v2209_v35, %v2209_v35  ;;  %v5760_v32 = vld [vmem:[%s7064_s8 + $0x1a0] sm:$0xff]   ;;  %v5762_v34 = vld [vmem:[%s7064_s8 + $0x1e8] sm:$0xff]   ;;  %v5763_v35 = vld [vmem:[%s7064_s8 + $0x138] sm:$0xff]  }
 0x4a5   : > { %v6518_v20 = vpack.c.bf16 %v2210_v36, %v2210_v36  ;;  %v5764_v36 = vld [vmem:[%s7064_s8 + $0x1a8] sm:$0xff]  }
 0x4a6   : > { %v6521_v19 = vsel %vm2218_vm9, %v2211_v37, 0  ;;  %v5765_v37 = vld [vmem:[%s7064_s8 + $0x1f0] sm:$0xff]  }
 0x4a7   : > { %4683 = vmatprep.subr.msk.bf16.mxu1 %vm2218_vm9, %v6518_v20  ;;  %4753 = vmatprep.subr.msk.bf16.mxu0 %vm2218_vm9, %v6518_v20 }
 0x4a8   : > { %2226 = vmatpush1.bf16.msra.mxu1 %v6521_v19 }
 0x4a9   : > { %4686 = vmatprep.subr.msk.bf16.mxu1 %vm2218_vm9, %v6518_v20 }
 0x4ab   : > { %4684 = vmatmul.mubr.msk.bf16.vlgmr.msra.gmra.mrb[32].mxu1 %vm2214_vm10, %v2213_v22  ;;  %v5768_v22 = vld [vmem:[%s7064_s8 + $0x1b8] sm:$0xff]  }
 0x4ac   : > { %2306 = vmatpush1.bf16.msra.mxu1 %v6521_v19  ;;  %2337 = vmatprep.mubr.bf16.mxu1 %v5847_v15 }
 0x4ad   : > { %5068 = vmatprep.subr.bf16.mxu1 %v5721_v38 }
 0x4b3   : > { %4687 = vmatmul.mubr.msk.bf16.vlgmr.msra.gmra.mrb[36].mxu1 %vm2214_vm10, %v4685_v39 }
 0x4b4   : > { %5069 = vmatpush3.bf16.msra.mxu1 %v5722_v41 }
 0x4b5   : > { %5070 = vmatprep.subr.bf16.mxu1 %v5723_v42 }
 0x4b8   : > { %5071 = vmatpush3.bf16.msra.mxu1 %v5724_v43 }
 0x4b9   : > { %5072 = vmatprep.subr.bf16.mxu1 %v5725_v44 }
 0x4bc   : > { %5073 = vmatpush3.bf16.msra.mxu1 %v5726_v45 }
 0x4bd   : > { %5074 = vmatprep.subr.bf16.mxu1 %v5727_v46 }
 0x4c0   : > { %5075 = vmatpush3.bf16.msra.mxu1 %v5728_v40 }
 0x4c1   : > { %5076 = vmatprep.subr.bf16.mxu1 %v5729_v47 }
 0x4c4   : > { %5077 = vmatpush3.bf16.msra.mxu1 %v5730_v48 }
 0x4c5   : > { %5078 = vmatprep.subr.bf16.mxu1 %v5731_v49 }
 0x4c8   : > { %5079 = vmatpush3.bf16.msra.mxu1 %v5732_v50 }
 0x4c9   : > { %5080 = vmatprep.subr.bf16.mxu1 %v5733_v51 }
 0x4cc   : > { %5081 = vmatpush3.bf16.msra.mxu1 %v5734_v52 }
 0x4cd   : > { %5082 = vmatprep.subr.bf16.mxu1 %v5735_v53 }
 0x4d0   : > { %5083 = vmatpush3.bf16.msra.mxu1 %v5736_v54 }
 0x4d1   : > { %5090 = vmatprep.subr.bf16.mxu1 %v5737_v55 }
 0x57e   : > { %v2259_v56 = vpop.f32.mrb[32].mxu1 }
 0x57f   : > { %v2261_v57 = vpop.f32.mrb[33].mxu1  ;;  %v2266_v61 = vpack.c.bf16 %v2259_v56, %v2259_v56 }
 0x580   : > { %v2267_v58 = vpack.c.bf16 %v2261_v57, %v2261_v57  ;;  %v2263_v59 = vpop.f32.mrb[34].mxu1 }
 0x581   : > { %v2264_v62 = vpop.f32.mrb[35].mxu1 }
 0x582   : > { %2645 = vmatprep.mubr.bf16.mxu1 %v2267_v58  ;;  %v5773_v62 = vld [vmem:[%s7067_s11 + $0x48] sm:$0xff]  }
 0x583   : > { %2646 = vmatmul.mubr.bf16.vlgmr.msra.gmra.mrb[40].mxu1 %v2266_v61  ;;  %v5771_v61 = vld [vmem:[%s7067_s11 + $0x40] sm:$0xff]  }
 0x584   : > { %5091 = vmatpush3.bf16.msra.mxu1 %v5738_v60 }
 0x585   : > { %5092 = vmatprep.subr.bf16.mxu1 %v5739_v63  ;;  %v5775_v63 = vld [vmem:[%s7067_s11 + $0x50] sm:$0xff]  }
 0x586   : > { %v2339_v3 = vpop.f32.mrb[36].mxu1 }
 0x587   : > { %v2341_v4 = vpop.f32.mrb[37].mxu1  ;;  %v2346_v7 = vpack.c.bf16 %v2339_v3, %v2339_v3  ;;  %v5781_v3 = vld [vmem:[%s7067_s11 + $0x68] sm:$0xff]  }
 0x588   : > { %v2347_v5 = vpack.c.bf16 %v2341_v4, %v2341_v4  ;;  %v2343_v6 = vpop.f32.mrb[38].mxu1  ;;  %5093 = vmatpush3.bf16.msra.mxu1 %v5740_v1  ;;  %v5777_v1 = vld [vmem:[%s7067_s11 + $0x58] sm:$0xff]  }
 0x589   : > { %v2344_v8 = vpop.f32.mrb[39].mxu1  ;;  %5094 = vmatprep.subr.bf16.mxu1 %v5741_v2  ;;  %v5779_v2 = vld [vmem:[%s7067_s11 + $0x60] sm:$0xff]  }
 0x58a   : > { %2509 = vmatprep.mubr.bf16.mxu0 %v2347_v5 }
 0x58b   : > { %2510 = vmatmul.mubr.bf16.vlgmr.msra.gmra.mrb[20].mxu0 %v2346_v7 }
 0x58c   : > { %2659 = vmatpush1.bf16.msra.mxu0 %v6521_v19  ;;  %2690 = vmatprep.mubr.bf16.mxu0 %v5847_v15 }
 0x58d   : > { %4804 = vmatprep.subr.msk.bf16.mxu0 %vm2218_vm9, %v6518_v20  ;;  %5095 = vmatpush3.bf16.msra.mxu1 %v5743_v9  ;;  %v5766_v20 = vld [vmem:[%s7064_s8 + $0x1b0] sm:$0xff]  }
 0x58e   : > { %5096 = vmatprep.subr.bf16.mxu1 %v5745_v14  ;;  %v4854_v14 = vld [vmem:[%s7065_s9] ss:$0 sm:$0xff] }
 0x591   : > { %5097 = vmatpush3.bf16.msra.mxu1 %v5747_v16 }
 0x592   : > { %5098 = vmatprep.subr.bf16.mxu1 %v5749_v18 }
 0x593   : > { %4754 = vmatmul.mubr.msk.bf16.vlgmr.msra.gmra.mrb[24].mxu0 %vm2214_vm10, %v4752_v10 }
 0x594   : > { %2877 = vmatpush1.bf16.msra.mxu0 %v6521_v19  ;;  %2908 = vmatprep.mubr.bf16.mxu0 %v5847_v15  ;;  %v5746_v15 = vld [vmem:[%s7064_s8 + $0x1c8] sm:$0xff]   ;;  %v5767_v19 = vld [vmem:[%s7064_s8 + $0x1f8] sm:$0xff]  }
 0x595   : > { %5112 = vmatprep.subr.bf16.mxu0 %v5742_v11  ;;  %5099 = vmatpush3.bf16.msra.mxu1 %v5751_v23 }
 0x596   : > { %5100 = vmatprep.subr.bf16.mxu1 %v5753_v25  ;;  %v3101_v25 = vld [vmem:[%s7066_s10] sm:$0xf] }
 0x599   : > { %5101 = vmatpush3.bf16.msra.mxu1 %v5755_v27  ;;  %v5769_v27 = vld [vmem:[%s7067_s11] sm:$0xff]  }
 0x59a   : > { %5102 = vmatprep.subr.bf16.mxu1 %v5757_v29  ;;  %v5772_v29 = vld [vmem:[%s7067_s11 + $0x10] sm:$0xff]  }
 0x59b   : > { %4805 = vmatmul.mubr.msk.bf16.vlgmr.msra.gmra.mrb[28].mxu0 %vm2214_vm10, %v4803_v12 }
 0x59c   : > { %5113 = vmatpush3.bf16.msra.mxu0 %v5744_v13 }
 0x59d   : > { %5114 = vmatprep.subr.bf16.mxu0 %v5746_v15  ;;  %5103 = vmatpush3.bf16.msra.mxu1 %v5759_v31  ;;  %v5776_v31 = vld [vmem:[%s7067_s11 + $0x20] sm:$0xff]  }
 0x59e   : > { %5104 = vmatprep.subr.bf16.mxu1 %v5761_v33  ;;  %v5780_v33 = vld [vmem:[%s7067_s11 + $0x30] sm:$0xff]  }
 0x5a0   : > { %5115 = vmatpush3.bf16.msra.mxu0 %v5748_v17 }
 0x5a1   : > { %5116 = vmatprep.subr.bf16.mxu0 %v5750_v21  ;;  %5105 = vmatpush3.bf16.msra.mxu1 %v5763_v35  ;;  %v5783_v35 = vld [vmem:[%s7067_s11 + $0x70] sm:$0xff]  }
 0x5a2   : > { %5254 = vmatprep.subr.bf16.mxu1 %v5845_v0 }
 0x5a4   : > { %5117 = vmatpush3.bf16.msra.mxu0 %v5752_v24 }
 0x5a5   : > { %5118 = vmatprep.subr.bf16.mxu0 %v5754_v26  ;;  %v4856_v26 = vld [vmem:[%s7066_s10 + $0x4] sm:$0xf] }
 0x5a8   : > { %5119 = vmatpush3.bf16.msra.mxu0 %v5756_v28  ;;  %v5770_v28 = vld [vmem:[%s7067_s11 + $0x8] sm:$0xff]  }
 0x5a9   : > { %5120 = vmatprep.subr.bf16.mxu0 %v5758_v30  ;;  %v5774_v30 = vld [vmem:[%s7067_s11 + $0x18] sm:$0xff]  }
 0x5ac   : > { %5121 = vmatpush3.bf16.msra.mxu0 %v5760_v32  ;;  %v5778_v32 = vld [vmem:[%s7067_s11 + $0x28] sm:$0xff]  }
 0x5ad   : > { %5122 = vmatprep.subr.bf16.mxu0 %v5762_v34  ;;  %v5782_v34 = vld [vmem:[%s7067_s11 + $0x38] sm:$0xff]  }
 0x5b0   : > { %5123 = vmatpush3.bf16.msra.mxu0 %v5764_v36  ;;  %v5784_v36 = vld [vmem:[%s7067_s11 + $0x78] sm:$0xff]  }
 0x5b1   : > { %5124 = vmatprep.subr.bf16.mxu0 %v5765_v37 }
 0x5b4   : > { %5125 = vmatpush3.bf16.msra.mxu0 %v5766_v20  ;;  %v5785_v20 = vld [vmem:[%s7067_s11 + $0x80] sm:$0xff]  }
 0x5b5   : > { %5126 = vmatprep.subr.bf16.mxu0 %v5767_v19 }
 0x5b8   : > { %5127 = vmatpush3.bf16.msra.mxu0 %v5768_v22 }
 0x5b9   : > { %5266 = vmatprep.subr.bf16.mxu0 %v5845_v0 }
 0x656   : > { %v5084_v38 = vpop.f32.mrb[40].mxu1 }
 0x657   : > { %v5085_v39 = vpop.f32.mrb[41].mxu1 }
 0x658   : > { %v5086_v41 = vadd.f32 %v5085_v39, %v5084_v38  ;;  %v5087_v42 = vpop.f32.mrb[42].mxu1 }
 0x659   : > { %v5088_v43 = vpop.f32.mrb[43].mxu1 }
 0x65e   : > { %v5062_v44 = vpop.f32.mrb[20].mxu0 }
 0x65f   : > { %v5063_v45 = vpop.f32.mrb[21].mxu0 }
 0x660   : > { %v5064_v46 = vadd.f32 %v5063_v45, %v5062_v44  ;;  %v5065_v40 = vpop.f32.mrb[22].mxu0  ;;  %v5787_v45 = vld [vmem:[%s7067_s11 + $0x90] sm:$0xff]  }
 0x661   : > { %v5066_v47 = vpop.f32.mrb[23].mxu0 }
 0x662   : > { %v2648_v48 = vadd.f32 %v5086_v41, %v5064_v46  ;;  %v5786_v41 = vld [vmem:[%s7067_s11 + $0x88] sm:$0xff]  }
 0x663   : > { %v4890_v47 = vld [vmem:[%s7066_s10 + $0x8] sm:$0xf] }
 0x666   : > { %v2692_v49 = vpop.f32.mrb[24].mxu0 }
 0x667   : > { %v2694_v50 = vpop.f32.mrb[25].mxu0  ;;  %v2699_v53 = vpack.c.bf16 %v2692_v49, %v2692_v49  ;;  %v5788_v49 = vld [vmem:[%s7067_s11 + $0xc0] sm:$0xff]  }
 0x668   : > { %v2700_v51 = vpack.c.bf16 %v2694_v50, %v2694_v50  ;;  %v2696_v52 = vpop.f32.mrb[26].mxu0  ;;  %v5789_v50 = vld [vmem:[%s7067_s11 + $0x98] sm:$0xff]  }
 0x669   : > { %v2697_v54 = vpop.f32.mrb[27].mxu0  ;;  %v5791_v52 = vld [vmem:[%s7067_s11 + $0xa0] sm:$0xff]  }
 0x66a   : > { %2862 = vmatprep.mubr.bf16.mxu1 %v2700_v51  ;;  %v5790_v51 = vld [vmem:[%s7067_s11 + $0xc8] sm:$0xff]  }
 0x66b   : > { %2863 = vmatmul.mubr.bf16.vlgmr.msra.gmra.mrb[44].mxu1 %v2699_v53  ;;  %v5792_v53 = vld [vmem:[%s7067_s11 + $0xd0] sm:$0xff]   ;;  %v5793_v54 = vld [vmem:[%s7067_s11 + $0xa8] sm:$0xff]  }
 0x66c   : > { %5256 = vmatprep.mubr.msk.bf16.mxu1 %vm5846_vm0, %v5845_v0 }
 0x66e   : > { %v2910_v55 = vpop.f32.mrb[28].mxu0 }
 0x66f   : > { %v2912_v56 = vpop.f32.mrb[29].mxu0  ;;  %v2917_v59 = vpack.c.bf16 %v2910_v55, %v2910_v55  ;;  %v5794_v55 = vld [vmem:[%s7067_s11 + $0xd8] sm:$0xff]  }
 0x670   : > { %v2918_v57 = vpack.c.bf16 %v2912_v56, %v2912_v56  ;;  %v2914_v58 = vpop.f32.mrb[30].mxu0  ;;  %v5795_v56 = vld [vmem:[%s7067_s11 + $0xb0] sm:$0xff]  }
 0x671   : > { %v2915_v60 = vpop.f32.mrb[31].mxu0  ;;  %v5797_v58 = vld [vmem:[%s7067_s11 + $0xb8] sm:$0xff]  }
 0x672   : > { %3080 = vmatprep.mubr.bf16.mxu0 %v2918_v57  ;;  %v5796_v57 = vld [vmem:[%s7067_s11 + $0xe0] sm:$0xff]   ;;  %v5799_v60 = vld [vmem:[%s7067_s11 + $0xf0] sm:$0xff]  }
 0x673   : > { %3081 = vmatmul.mubr.bf16.vlgmr.msra.gmra.mrb[32].mxu0 %v2917_v59  ;;  %v5798_v59 = vld [vmem:[%s7067_s11 + $0xe8] sm:$0xff]  }
 0x674   : > { %5282 = vmatprep.mubr.msk.bf16.mxu0 %vm5846_vm0, %v5845_v0  ;;  %5267 = vmatpush3.bf16.msra.mxu0 %v5771_v61  ;;  %v5800_v61 = vld [vmem:[%s7067_s11 + $0xf8] sm:$0xff]  }
 0x675   : > { %5268 = vmatprep.subr.bf16.mxu0 %v5845_v0 }
 0x678   : > { %5269 = vmatpush3.bf16.msra.mxu0 %v5773_v62 }
 0x679   : > { %5270 = vmatprep.subr.bf16.mxu0 %v5845_v0 }
 0x67c   : > { %5271 = vmatpush3.bf16.msra.mxu0 %v5775_v63 }
 0x67d   : > { %5272 = vmatprep.subr.bf16.mxu0 %v5845_v0 }
 0x680   : > { %5273 = vmatpush3.bf16.msra.mxu0 %v5777_v1 }
 0x681   : > { %5274 = vmatprep.subr.bf16.mxu0 %v5845_v0 }
 0x684   : > { %5275 = vmatpush3.bf16.msra.mxu0 %v5779_v2 }
 0x685   : > { %5276 = vmatprep.subr.bf16.mxu0 %v5845_v0 }
 0x688   : > { %5277 = vmatpush3.bf16.msra.mxu0 %v5781_v3 }
 0x689   : > { %5278 = vmatprep.subr.bf16.mxu0 %v5845_v0 }
 0x68c   : > { %5279 = vmatpush3.bf16.msra.mxu0 %v5783_v35 }
 0x68d   : > { %5280 = vmatprep.subr.bf16.mxu0 %v5845_v0 }
 0x690   : > { %5281 = vmatpush3.bf16.msra.mxu0 %v5784_v36 }
 0x691   : > { %5306 = vmatprep.subr.bf16.mxu0 %v5845_v0 }
 0x73e   : > { %v5106_v4 = vpop.f32.mrb[44].mxu1 }
 0x73f   : > { %v5107_v5 = vpop.f32.mrb[45].mxu1 }
 0x740   : > { %v5108_v6 = vadd.f32 %v5107_v5, %v5106_v4  ;;  %v5109_v7 = vpop.f32.mrb[46].mxu1 }
 0x741   : > { %v5110_v8 = vpop.f32.mrb[47].mxu1 }
 0x742   : > { %v2870_v9 = vadd.f32 %v5108_v6, %v2648_v48  ;;  %v4916_v48 = vld [vmem:[%s7066_s10 + $0xc] sm:$0xf] }
 0x746   : > { %v5128_v10 = vpop.f32.mrb[32].mxu0 }
 0x747   : > { %v5129_v11 = vpop.f32.mrb[33].mxu0 }
 0x748   : > { %v5130_v12 = vadd.f32 %v5129_v11, %v5128_v10  ;;  %v5131_v13 = vpop.f32.mrb[34].mxu0 }
 0x749   : > { %v5132_v15 = vpop.f32.mrb[35].mxu0 }
 0x74a   : > { %v3088_v16 = vadd.f32 %v5130_v12, %v2870_v9 }
 0x74c   : > { %v3096_v17 = vadd.f32 %v4854_v14, %v3088_v16 }
 0x74e   : > { %v3098_v18 = vmul.f32 0.2, %v3096_v17  ;;  %vm3097_vm11 = vcmp.gt.f32.partialorder %v3096_v17, 0.0 }
 0x750   : > { %v3099_v21 = vsel %vm3097_vm11, %v3096_v17, %v3098_v18  ;;  %v5803_v18 = vld [vmem:[%s7070_s14 + $0x40] sm:$0xff]  }
 0x751   : > { %v3100_v23 = vpack.c.bf16 %v3099_v21, %v3099_v21  ;;  %v5805_v21 = vld [vmem:[%s7070_s14 + $0x48] sm:$0xff]  }
 0x753   : > { %v6732_v24 = vsel %vm2218_vm9, %v3100_v23, 0  ;;  %v5807_v23 = vld [vmem:[%s7070_s14 + $0x50] sm:$0xff]  }
 0x754   : > { %5255 = vmatpush3.bf16.msra.mxu1 %v6732_v24 }
 0x755   : > { %5260 = vmatprep.subr.bf16.mxu1 %v5845_v0 }
 0x757   : > { %5257 = vmatmul.mubr.msk.bf16.vlgmr.msra.gmra.mrb[48].mxu1 %vm2214_vm10, %v3101_v25  ;;  %v5811_v25 = vld [vmem:[%s7070_s14 + $0x60] sm:$0xff]  }
 0x758   : > { %5261 = vmatpush3.bf16.msra.mxu1 %v6732_v24  ;;  %5262 = vmatprep.mubr.msk.bf16.mxu1 %vm5846_vm0, %v5845_v0 }
 0x759   : > { %5286 = vmatprep.subr.bf16.mxu1 %v5845_v0 }
 0x75f   : > { %5263 = vmatmul.mubr.msk.bf16.vlgmr.msra.gmra.mrb[52].mxu1 %vm2214_vm10, %v4856_v26  ;;  %v5813_v26 = vld [vmem:[%s7070_s14 + $0x68] sm:$0xff]  }
 0x760   : > { %5287 = vmatpush3.bf16.msra.mxu1 %v5769_v27  ;;  %5302 = vmatprep.mubr.msk.bf16.mxu1 %vm5846_vm0, %v5845_v0 }
 0x761   : > { %5288 = vmatprep.subr.bf16.mxu1 %v5845_v0 }
 0x764   : > { %5289 = vmatpush3.bf16.msra.mxu1 %v5770_v28 }
 0x765   : > { %5290 = vmatprep.subr.bf16.mxu1 %v5845_v0 }
 0x768   : > { %5291 = vmatpush3.bf16.msra.mxu1 %v5772_v29 }
 0x769   : > { %5292 = vmatprep.subr.bf16.mxu1 %v5845_v0 }
 0x76c   : > { %5293 = vmatpush3.bf16.msra.mxu1 %v5774_v30 }
 0x76d   : > { %5294 = vmatprep.subr.bf16.mxu1 %v5845_v0 }
 0x770   : > { %5295 = vmatpush3.bf16.msra.mxu1 %v5776_v31 }
 0x771   : > { %5296 = vmatprep.subr.bf16.mxu1 %v5845_v0 }
 0x774   : > { %5297 = vmatpush3.bf16.msra.mxu1 %v5778_v32 }
 0x775   : > { %5298 = vmatprep.subr.bf16.mxu1 %v5845_v0 }
 0x778   : > { %5299 = vmatpush3.bf16.msra.mxu1 %v5780_v33  ;;  %v4942_v33 = vld [vmem:[%s7068_s12] ss:$0 sm:$0xff] }
 0x779   : > { %5300 = vmatprep.subr.bf16.mxu1 %v5845_v0 }
 0x77c   : > { %5301 = vmatpush3.bf16.msra.mxu1 %v5782_v34 }
 0x77d   : > { %5312 = vmatprep.subr.bf16.mxu1 %v5845_v0 }
 0x82a   : > { %v3142_v37 = vpop.f32.mrb[48].mxu1 }
 0x82b   : > { %v3148_v19 = vpack.c.bf16 %v3142_v37, %v3142_v37  ;;  %v5258_v22 = vpop.f32.mrb[49].mxu1 }
 0x82c   : > { %v3145_v38 = vpop.f32.mrb[50].mxu1 }
 0x82d   : > { %v5259_v39 = vpop.f32.mrb[51].mxu1  ;;  %5303 = vmatmul.mubr.bf16.vlgmr.msra.gmra.mrb[56].mxu1 %v3148_v19 }
 0x82e   : > { %5313 = vmatpush3.bf16.msra.mxu1 %v5785_v20  ;;  %5328 = vmatprep.mubr.msk.bf16.mxu1 %vm5846_vm0, %v5845_v0 }
 0x82f   : > { %5314 = vmatprep.subr.bf16.mxu1 %v5845_v0 }
 0x832   : > { %v3204_v42 = vpop.f32.mrb[52].mxu1  ;;  %5315 = vmatpush3.bf16.msra.mxu1 %v5786_v41  ;;  %v3720_v41 = vld [vmem:[%s7069_s13] sm:$0xf] }
 0x833   : > { %v3210_v43 = vpack.c.bf16 %v3204_v42, %v3204_v42  ;;  %v5264_v44 = vpop.f32.mrb[53].mxu1  ;;  %5316 = vmatprep.subr.bf16.mxu1 %v5845_v0  ;;  %v4944_v42 = vld [vmem:[%s7069_s13 + $0x4] sm:$0xf] }
 0x834   : > { %v3207_v46 = vpop.f32.mrb[54].mxu1  ;;  %v5802_v44 = vld [vmem:[%s7070_s14 + $0x8] sm:$0xff]  }
 0x835   : > { %v5265_v40 = vpop.f32.mrb[55].mxu1  ;;  %5283 = vmatmul.mubr.bf16.vlgmr.msra.gmra.mrb[36].mxu0 %v3210_v43  ;;  %v5801_v43 = vld [vmem:[%s7070_s14] sm:$0xff]   ;;  %v5806_v46 = vld [vmem:[%s7070_s14 + $0x18] sm:$0xff]  }
 0x836   : > { %5307 = vmatpush3.bf16.msra.mxu0 %v6732_v24  ;;  %5308 = vmatprep.mubr.msk.bf16.mxu0 %vm5846_vm0, %v5845_v0  ;;  %v5808_v40 = vld [vmem:[%s7070_s14 + $0x20] sm:$0xff]  }
 0x837   : > { %5332 = vmatprep.subr.bf16.mxu0 %v5845_v0  ;;  %5317 = vmatpush3.bf16.msra.mxu1 %v5787_v45  ;;  %v5804_v45 = vld [vmem:[%s7070_s14 + $0x10] sm:$0xff]  }
 0x838   : > { %5318 = vmatprep.subr.bf16.mxu1 %v5845_v0 }
 0x83b   : > { %5319 = vmatpush3.bf16.msra.mxu1 %v5789_v50  ;;  %v5815_v50 = vld [vmem:[%s7070_s14 + $0x70] sm:$0xff]  }
 0x83c   : > { %5320 = vmatprep.subr.bf16.mxu1 %v5845_v0 }
 0x83d   : > { %5309 = vmatmul.mubr.msk.bf16.vlgmr.msra.gmra.mrb[40].mxu0 %vm2214_vm10, %v4890_v47  ;;  %v5810_v47 = vld [vmem:[%s7070_s14 + $0x28] sm:$0xff]  }
 0x83e   : > { %5333 = vmatpush3.bf16.msra.mxu0 %v6732_v24  ;;  %5334 = vmatprep.mubr.msk.bf16.mxu0 %vm5846_vm0, %v5845_v0  ;;  %v5809_v24 = vld [vmem:[%s7070_s14 + $0x58] sm:$0xff]  }
 0x83f   : > { %5338 = vmatprep.subr.bf16.mxu0 %v5845_v0  ;;  %5321 = vmatpush3.bf16.msra.mxu1 %v5791_v52 }
 0x840   : > { %5322 = vmatprep.subr.bf16.mxu1 %v5845_v0 }
 0x843   : > { %5323 = vmatpush3.bf16.msra.mxu1 %v5793_v54 }
 0x844   : > { %5324 = vmatprep.subr.bf16.mxu1 %v5845_v0 }
 0x845   : > { %5335 = vmatmul.mubr.msk.bf16.vlgmr.msra.gmra.mrb[44].mxu0 %vm2214_vm10, %v4916_v48  ;;  %v5812_v48 = vld [vmem:[%s7070_s14 + $0x30] sm:$0xff]  }
 0x846   : > { %5339 = vmatpush3.bf16.msra.mxu0 %v5788_v49  ;;  %5354 = vmatprep.mubr.msk.bf16.mxu0 %vm5846_vm0, %v5845_v0  ;;  %v5814_v49 = vld [vmem:[%s7070_s14 + $0x38] sm:$0xff]  }
 0x847   : > { %5340 = vmatprep.subr.bf16.mxu0 %v5845_v0  ;;  %5325 = vmatpush3.bf16.msra.mxu1 %v5795_v56 }
 0x848   : > { %5326 = vmatprep.subr.bf16.mxu1 %v5845_v0 }
 0x84a   : > { %5341 = vmatpush3.bf16.msra.mxu0 %v5790_v51  ;;  %v5816_v51 = vld [vmem:[%s7070_s14 + $0x78] sm:$0xff]  }
 0x84b   : > { %5342 = vmatprep.subr.bf16.mxu0 %v5845_v0  ;;  %5327 = vmatpush3.bf16.msra.mxu1 %v5797_v58  ;;  %v5818_v58 = vld [vmem:[%s7070_s14 + $0x88] sm:$0xff]  }
 0x84c   : > { %5358 = vmatprep.subr.bf16.mxu1 %v5845_v0 }
 0x84e   : > { %5343 = vmatpush3.bf16.msra.mxu0 %v5792_v53  ;;  %v5817_v53 = vld [vmem:[%s7070_s14 + $0x80] sm:$0xff]  }
 0x84f   : > { %5344 = vmatprep.subr.bf16.mxu0 %v5845_v0 }
 0x852   : > { %5345 = vmatpush3.bf16.msra.mxu0 %v5794_v55 }
 0x853   : > { %5346 = vmatprep.subr.bf16.mxu0 %v5845_v0 }
 0x856   : > { %5347 = vmatpush3.bf16.msra.mxu0 %v5796_v57 }
 0x857   : > { %5348 = vmatprep.subr.bf16.mxu0 %v5845_v0 }
 0x85a   : > { %5349 = vmatpush3.bf16.msra.mxu0 %v5798_v59 }
 0x85b   : > { %5350 = vmatprep.subr.bf16.mxu0 %v5845_v0 }
 0x85e   : > { %5351 = vmatpush3.bf16.msra.mxu0 %v5799_v60 }
 0x85f   : > { %5352 = vmatprep.subr.bf16.mxu0 %v5845_v0 }
 0x862   : > { %5353 = vmatpush3.bf16.msra.mxu0 %v5800_v61 }
 0x863   : > { %5370 = vmatprep.subr.bf16.mxu0 %v5845_v0 }
 0x900   : > { %v3398_v62 = vpop.f32.mrb[56].mxu1 }
 0x901   : > { %v5304_v63 = vpop.f32.mrb[57].mxu1 }
 0x902   : > { %v3401_v1 = vpop.f32.mrb[58].mxu1 }
 0x903   : > { %v5305_v2 = vpop.f32.mrb[59].mxu1 }
 0x904   : > { %v5821_v2 = vld [vmem:[%s7070_s14 + $0x98] sm:$0xff]  }
 0x908   : > { %v3310_v3 = vpop.f32.mrb[36].mxu0 }
 0x909   : > { %v3399_v4 = vadd.f32 %v3398_v62, %v3310_v3  ;;  %v5284_v5 = vpop.f32.mrb[37].mxu0  ;;  %v5819_v62 = vld [vmem:[%s7070_s14 + $0x90] sm:$0xff]   ;;  %v4978_v3 = vld [vmem:[%s7069_s13 + $0x8] sm:$0xf] }
 0x90a   : > { %v3313_v6 = vpop.f32.mrb[38].mxu0  ;;  %v5820_v5 = vld [vmem:[%s7070_s14 + $0xc0] sm:$0xff]  }
 0x90b   : > { %v5285_v7 = vpop.f32.mrb[39].mxu0  ;;  %v5822_v6 = vld [vmem:[%s7070_s14 + $0xc8] sm:$0xff]  }
 0x90c   : > { %v5823_v7 = vld [vmem:[%s7070_s14 + $0xa0] sm:$0xff]  }
 0x910   : > { %v3443_v8 = vpop.f32.mrb[40].mxu0 }
 0x911   : > { %v3449_v9 = vpack.c.bf16 %v3443_v8, %v3443_v8  ;;  %v5310_v10 = vpop.f32.mrb[41].mxu0  ;;  %v5824_v8 = vld [vmem:[%s7070_s14 + $0xd0] sm:$0xff]  }
 0x912   : > { %v3446_v11 = vpop.f32.mrb[42].mxu0  ;;  %v5826_v10 = vld [vmem:[%s7070_s14 + $0xd8] sm:$0xff]  }
 0x913   : > { %v5311_v12 = vpop.f32.mrb[43].mxu0  ;;  %5329 = vmatmul.mubr.bf16.vlgmr.msra.gmra.mrb[60].mxu1 %v3449_v9  ;;  %v5825_v9 = vld [vmem:[%s7070_s14 + $0xa8] sm:$0xff]   ;;  %v5827_v11 = vld [vmem:[%s7070_s14 + $0xb0] sm:$0xff]  }
 0x914   : > { %5360 = vmatprep.mubr.msk.bf16.mxu1 %vm5846_vm0, %v5845_v0  ;;  %v5828_v12 = vld [vmem:[%s7070_s14 + $0xe0] sm:$0xff]  }
 0x918   : > { %v3595_v13 = vpop.f32.mrb[44].mxu0 }
 0x919   : > { %v3601_v14 = vpack.c.bf16 %v3595_v13, %v3595_v13  ;;  %v5336_v15 = vpop.f32.mrb[45].mxu0  ;;  %v5829_v13 = vld [vmem:[%s7070_s14 + $0xb8] sm:$0xff]  }
 0x91a   : > { %v3598_v16 = vpop.f32.mrb[46].mxu0  ;;  %v5831_v15 = vld [vmem:[%s7070_s14 + $0xf0] sm:$0xff]  }
 0x91b   : > { %v5337_v17 = vpop.f32.mrb[47].mxu0  ;;  %5355 = vmatmul.mubr.bf16.vlgmr.msra.gmra.mrb[48].mxu0 %v3601_v14  ;;  %v5830_v14 = vld [vmem:[%s7070_s14 + $0xe8] sm:$0xff]   ;;  %v5832_v16 = vld [vmem:[%s7070_s14 + $0xf8] sm:$0xff]  }
 0x91c   : > { %5386 = vmatprep.mubr.msk.bf16.mxu0 %vm5846_vm0, %v5845_v0  ;;  %5371 = vmatpush3.bf16.msra.mxu0 %v5803_v18 }
 0x91d   : > { %5372 = vmatprep.subr.bf16.mxu0 %v5845_v0 }
 0x920   : > { %5373 = vmatpush3.bf16.msra.mxu0 %v5805_v21 }
 0x921   : > { %5374 = vmatprep.subr.bf16.mxu0 %v5845_v0 }
 0x924   : > { %5375 = vmatpush3.bf16.msra.mxu0 %v5807_v23 }
 0x925   : > { %5376 = vmatprep.subr.bf16.mxu0 %v5845_v0 }
 0x928   : > { %5377 = vmatpush3.bf16.msra.mxu0 %v5809_v24 }
 0x929   : > { %5378 = vmatprep.subr.bf16.mxu0 %v5845_v0 }
 0x92c   : > { %5379 = vmatpush3.bf16.msra.mxu0 %v5811_v25 }
 0x92d   : > { %5380 = vmatprep.subr.bf16.mxu0 %v5845_v0 }
 0x930   : > { %5381 = vmatpush3.bf16.msra.mxu0 %v5813_v26 }
 0x931   : > { %5382 = vmatprep.subr.bf16.mxu0 %v5845_v0 }
 0x934   : > { %5383 = vmatpush3.bf16.msra.mxu0 %v5815_v50 }
 0x935   : > { %5384 = vmatprep.subr.bf16.mxu0 %v5845_v0 }
 0x938   : > { %5385 = vmatpush3.bf16.msra.mxu0 %v5816_v51 }
 0x939   : > { %5410 = vmatprep.subr.bf16.mxu0 %v5845_v0 }
 0x9e6   : > { %v3549_v27 = vpop.f32.mrb[60].mxu1 }
 0x9e7   : > { %v3555_v28 = vadd.f32 %v3549_v27, %v3399_v4  ;;  %v5330_v29 = vpop.f32.mrb[61].mxu1  ;;  %v5004_v4 = vld [vmem:[%s7069_s13 + $0xc] sm:$0xf] }
 0x9e8   : > { %v3552_v30 = vpop.f32.mrb[62].mxu1 }
 0x9e9   : > { %v5331_v31 = vpop.f32.mrb[63].mxu1 }
 0x9ee   : > { %v3701_v32 = vpop.f32.mrb[48].mxu0 }
 0x9ef   : > { %v3707_v34 = vadd.f32 %v3701_v32, %v3555_v28  ;;  %v5356_v35 = vpop.f32.mrb[49].mxu0 }
 0x9f0   : > { %v3704_v36 = vpop.f32.mrb[50].mxu0 }
 0x9f1   : > { %v3715_v37 = vadd.f32 %v4942_v33, %v3707_v34  ;;  %v5357_v20 = vpop.f32.mrb[51].mxu0 }
 0x9f3   : > { %vm3716_vm12 = vcmp.gt.f32.partialorder %v3715_v37, 0.0  ;;  %v3717_v19 = vmul.f32 0.2, %v3715_v37 }
 0x9f5   : > { %v3718_v22 = vsel %vm3716_vm12, %v3715_v37, %v3717_v19 }
 0x9f6   : > { %v3719_v38 = vpack.c.bf16 %v3718_v22, %v3718_v22 }
 0x9f8   : > { %v6906_v39 = vsel %vm2218_vm9, %v3719_v38, 0 }
 0x9f9   : > { %5359 = vmatpush3.bf16.msra.mxu1 %v6906_v39 }
 0x9fa   : > { %5364 = vmatprep.subr.bf16.mxu1 %v5845_v0 }
 0x9fc   : > { %5361 = vmatmul.mubr.msk.bf16.vlgmr.msra.gmra.mrb[64].mxu1 %vm2214_vm10, %v3720_v41 }
 0x9fd   : > { %5365 = vmatpush3.bf16.msra.mxu1 %v6906_v39  ;;  %5366 = vmatprep.mubr.msk.bf16.mxu1 %vm5846_vm0, %v5845_v0 }
 0x9fe   : > { %5390 = vmatprep.subr.bf16.mxu1 %v5845_v0 }
 0xa04   : > { %5367 = vmatmul.mubr.msk.bf16.vlgmr.msra.gmra.mrb[68].mxu1 %vm2214_vm10, %v4944_v42  ;;  %v5030_v42 = vld [vmem:[%s7071_s15] ss:$0 sm:$0xff] }
 0xa05   : > { %5391 = vmatpush3.bf16.msra.mxu1 %v5801_v43  ;;  %5406 = vmatprep.mubr.msk.bf16.mxu1 %vm5846_vm0, %v5845_v0 }
 0xa06   : > { %5392 = vmatprep.subr.bf16.mxu1 %v5845_v0 }
 0xa09   : > { %5393 = vmatpush3.bf16.msra.mxu1 %v5802_v44 }
 0xa0a   : > { %5394 = vmatprep.subr.bf16.mxu1 %v5845_v0 }
 0xa0d   : > { %5395 = vmatpush3.bf16.msra.mxu1 %v5804_v45 }
 0xa0e   : > { %5396 = vmatprep.subr.bf16.mxu1 %v5845_v0 }
 0xa11   : > { %5397 = vmatpush3.bf16.msra.mxu1 %v5806_v46 }
 0xa12   : > { %5398 = vmatprep.subr.bf16.mxu1 %v5845_v0 }
 0xa15   : > { %5399 = vmatpush3.bf16.msra.mxu1 %v5808_v40 }
 0xa16   : > { %5400 = vmatprep.subr.bf16.mxu1 %v5845_v0 }
 0xa19   : > { %5401 = vmatpush3.bf16.msra.mxu1 %v5810_v47 }
 0xa1a   : > { %5402 = vmatprep.subr.bf16.mxu1 %v5845_v0 }
 0xa1d   : > { %5403 = vmatpush3.bf16.msra.mxu1 %v5812_v48 }
 0xa1e   : > { %5404 = vmatprep.subr.bf16.mxu1 %v5845_v0 }
 0xa21   : > { %5405 = vmatpush3.bf16.msra.mxu1 %v5814_v49 }
 0xa22   : > { %5416 = vmatprep.subr.bf16.mxu1 %v5845_v0 }
 0xacf   : > { %v3761_v52 = vpop.f32.mrb[64].mxu1 }
 0xad0   : > { %v3767_v54 = vpack.c.bf16 %v3761_v52, %v3761_v52  ;;  %v5362_v55 = vpop.f32.mrb[65].mxu1 }
 0xad1   : > { %v3764_v56 = vpop.f32.mrb[66].mxu1 }
 0xad2   : > { %v5363_v57 = vpop.f32.mrb[67].mxu1  ;;  %5407 = vmatmul.mubr.bf16.vlgmr.msra.gmra.mrb[72].mxu1 %v3767_v54 }
 0xad3   : > { %5417 = vmatpush3.bf16.msra.mxu1 %v5817_v53  ;;  %5432 = vmatprep.mubr.msk.bf16.mxu1 %vm5846_vm0, %v5845_v0 }
 0xad4   : > { %5418 = vmatprep.subr.bf16.mxu1 %v5845_v0 }
 0xad7   : > { %v3823_v59 = vpop.f32.mrb[68].mxu1  ;;  %5419 = vmatpush3.bf16.msra.mxu1 %v5818_v58 }
 0xad8   : > { %v3829_v60 = vpack.c.bf16 %v3823_v59, %v3823_v59  ;;  %v5368_v61 = vpop.f32.mrb[69].mxu1  ;;  %5420 = vmatprep.subr.bf16.mxu1 %v5845_v0 }
 0xad9   : > { %v3826_v63 = vpop.f32.mrb[70].mxu1 }
 0xada   : > { %5387 = vmatmul.mubr.bf16.vlgmr.msra.gmra.mrb[52].mxu0 %v3829_v60  ;;  %v5369_v1 = vpop.f32.mrb[71].mxu1 }
 0xadb   : > { %5411 = vmatpush3.bf16.msra.mxu0 %v6906_v39  ;;  %5412 = vmatprep.mubr.msk.bf16.mxu0 %vm5846_vm0, %v5845_v0 }
 0xadc   : > { %5436 = vmatprep.subr.bf16.mxu0 %v5845_v0  ;;  %5421 = vmatpush3.bf16.msra.mxu1 %v5819_v62 }
 0xadd   : > { %5422 = vmatprep.subr.bf16.mxu1 %v5845_v0 }
 0xae0   : > { %5423 = vmatpush3.bf16.msra.mxu1 %v5821_v2 }
 0xae1   : > { %5424 = vmatprep.subr.bf16.mxu1 %v5845_v0 }
 0xae2   : > { %5413 = vmatmul.mubr.msk.bf16.vlgmr.msra.gmra.mrb[56].mxu0 %vm2214_vm10, %v4978_v3 }
 0xae3   : > { %5437 = vmatpush3.bf16.msra.mxu0 %v6906_v39  ;;  %5438 = vmatprep.mubr.msk.bf16.mxu0 %vm5846_vm0, %v5845_v0 }
 0xae4   : > { %5442 = vmatprep.subr.bf16.mxu0 %v5845_v0  ;;  %5425 = vmatpush3.bf16.msra.mxu1 %v5823_v7 }
 0xae5   : > { %5426 = vmatprep.subr.bf16.mxu1 %v5845_v0 }
 0xae8   : > { %5427 = vmatpush3.bf16.msra.mxu1 %v5825_v9 }
 0xae9   : > { %5428 = vmatprep.subr.bf16.mxu1 %v5845_v0 }
 0xaea   : > { %5439 = vmatmul.mubr.msk.bf16.vlgmr.msra.gmra.mrb[60].mxu0 %vm2214_vm10, %v5004_v4 }
 0xaeb   : > { %5443 = vmatpush3.bf16.msra.mxu0 %v5820_v5  ;;  %5458 = vmatprep.mubr.msk.bf16.mxu0 %vm5846_vm0, %v5845_v0 }
 0xaec   : > { %5444 = vmatprep.subr.bf16.mxu0 %v5845_v0  ;;  %5429 = vmatpush3.bf16.msra.mxu1 %v5827_v11 }
 0xaed   : > { %5430 = vmatprep.subr.bf16.mxu1 %v5845_v0 }
 0xaef   : > { %5445 = vmatpush3.bf16.msra.mxu0 %v5822_v6 }
 0xaf0   : > { %5446 = vmatprep.subr.bf16.mxu0 %v5845_v0  ;;  %5431 = vmatpush3.bf16.msra.mxu1 %v5829_v13 }
 0xaf3   : > { %5447 = vmatpush3.bf16.msra.mxu0 %v5824_v8 }
 0xaf4   : > { %5448 = vmatprep.subr.bf16.mxu0 %v5845_v0 }
 0xaf7   : > { %5449 = vmatpush3.bf16.msra.mxu0 %v5826_v10 }
 0xaf8   : > { %5450 = vmatprep.subr.bf16.mxu0 %v5845_v0 }
 0xafb   : > { %5451 = vmatpush3.bf16.msra.mxu0 %v5828_v12 }
 0xafc   : > { %5452 = vmatprep.subr.bf16.mxu0 %v5845_v0 }
 0xaff   : > { %5453 = vmatpush3.bf16.msra.mxu0 %v5830_v14 }
 0xb00   : > { %5454 = vmatprep.subr.bf16.mxu0 %v5845_v0 }
 0xb03   : > { %5455 = vmatpush3.bf16.msra.mxu0 %v5831_v15 }
 0xb04   : > { %5456 = vmatprep.subr.bf16.mxu0 %v5845_v0 }
 0xb07   : > { %5457 = vmatpush3.bf16.msra.mxu0 %v5832_v16 }
 0xba5   : > { %v4017_v17 = vpop.f32.mrb[72].mxu1 }
 0xba6   : > { %v5408_v18 = vpop.f32.mrb[73].mxu1 }
 0xba7   : > { %v4020_v21 = vpop.f32.mrb[74].mxu1 }
 0xba8   : > { %v5409_v23 = vpop.f32.mrb[75].mxu1 }
 0xbad   : > { %v3929_v24 = vpop.f32.mrb[52].mxu0 }
 0xbae   : > { %v4018_v25 = vadd.f32 %v4017_v17, %v3929_v24  ;;  %v5388_v26 = vpop.f32.mrb[53].mxu0 }
 0xbaf   : > { %v3932_v27 = vpop.f32.mrb[54].mxu0 }
 0xbb0   : > { %v5389_v28 = vpop.f32.mrb[55].mxu0 }
 0xbb5   : > { %v4062_v29 = vpop.f32.mrb[56].mxu0 }
 0xbb6   : > { %v4068_v30 = vpack.c.bf16 %v4062_v29, %v4062_v29  ;;  %v5414_v31 = vpop.f32.mrb[57].mxu0 }
 0xbb7   : > { %v4065_v32 = vpop.f32.mrb[58].mxu0 }
 0xbb8   : > { %5433 = vmatmul.mubr.bf16.vlgmr.msra.gmra.mrb[76].mxu1 %v4068_v30  ;;  %v5415_v0 = vpop.f32.mrb[59].mxu0 }
 0xbbd   : > { %v4214_v33 = vpop.f32.mrb[60].mxu0 }
 0xbbe   : > { %v4220_v34 = vpack.c.bf16 %v4214_v33, %v4214_v33  ;;  %v5440_v35 = vpop.f32.mrb[61].mxu0 }
 0xbbf   : > { %v4217_v36 = vpop.f32.mrb[62].mxu0 }
 0xbc0   : > { %5459 = vmatmul.mubr.bf16.vlgmr.msra.gmra.mrb[64].mxu0 %v4220_v34  ;;  %v5441_v37 = vpop.f32.mrb[63].mxu0 }
 0xc8b   : > { %v4168_v20 = vpop.f32.mrb[76].mxu1 }
 0xc8c   : > { %v4174_v19 = vadd.f32 %v4168_v20, %v4018_v25  ;;  %v5434_v22 = vpop.f32.mrb[77].mxu1 }
 0xc8d   : > { %v4171_v38 = vpop.f32.mrb[78].mxu1 }
 0xc8e   : > { %v5435_v39 = vpop.f32.mrb[79].mxu1 }
 0xc93   : > { %v4320_v41 = vpop.f32.mrb[64].mxu0 }
 0xc94   : > { %v4326_v43 = vadd.f32 %v4320_v41, %v4174_v19  ;;  %v5460_v44 = vpop.f32.mrb[65].mxu0 }
 0xc95   : > { %v4323_v45 = vpop.f32.mrb[66].mxu0 }
 0xc96   : > { %v4334_v46 = vadd.f32 %v5030_v42, %v4326_v43  ;;  %v5461_v40 = vpop.f32.mrb[67].mxu0 }
 0xc98   : > { %vm4335_vm13 = vcmp.gt.f32.partialorder %v4334_v46, 0.0  ;;  %v4336_v47 = vmul.f32 0.2, %v4334_v46 }
 0xc9a   : > { %v4337_v48 = vsel %vm4335_vm13, %v4334_v46, %v4336_v47 }
 0xc9b   : > { %v4338_v49 = vsub.f32 0.0, %v4337_v48 }
 0xc9d   : > { %v4339_v50 = vmul.f32 1.442695, %v4338_v49 }
 0xc9f   : > { %5833 = vpow2.f32 %v4339_v50 }
 0xca9   : > { %v5834_v51 = vpop.eup %5833 }
 0xcaa   : > { %v4341_v52 = vadd.f32 1.0, %v5834_v51 }
 0xcac   : > { %5835 = vrcp.f32 %v4341_v52 }
 0xcb6   : > { %v5836_v53 = vpop.eup %5835 }
 0xcb7   : > { %4344 = vst [vmem:[%s519_s27] sm:$0xff] %v5836_v53 }
 0xcb8 PF: > { %s26_s21 = sadd.s32 1, %s5843_s21  }
 0xcb9   : > { %p23_p4 = scmp.ge.s32.totalorder %s26_s21, 4  }
 0xcbb   :  { %25 = sbr.rel (!%p23_p4) target bundleno = 2 (0x2), region = 144 }

</bundles_post_ra>
